<compile_context>
chip_gen: v6e
topology: v6e:2x2x1
jax: 0.10.0
libtpu: 0.0.40
codegen_flags: <defaults>
</compile_context>

<pallas_src>
import jax
import jax.numpy as jnp
from jax.experimental import pallas as pl
from jax.experimental.pallas import tpu as pltpu

NEG_SLOPE = 0.2


def _leaky(x):
    # mul + max: one fewer VALU op than compare+select.
    return jnp.maximum(x, NEG_SLOPE * x)


# --------------------------------------------------------------------------
# Fused kernel: conv1 -> conv2 -> K-max -> conv3 -> N-max -> head
#   grid = (B, N_tiles); B "parallel", N-tile axis "arbitrary".
#   BN scales are folded into the weights; conv2/conv3 bias + LeakyReLU are
#   applied AFTER the max reductions (exact by monotonicity).
# --------------------------------------------------------------------------
def transform_net_kernel(
    x_ref,                 # (K, TN, 18)   bf16
    w1_ref, b1_ref,        # (18, 64)   bf16 (scale-folded), (1, 64)   f32
    w2_ref, b2_ref,        # (64, 128)  bf16 (scale-folded), (1, 128)  f32
    w3_ref, b3_ref,        # (128, 1024) bf16 (scale-folded), (1, 1024) f32
    l1_ref, b4_ref,        # (1024, 512) bf16 (scale-folded), (1, 512)  f32
    l2_ref, b5_ref,        # (512, 256)  bf16 (scale-folded), (1, 256)  f32
    tw_ref, tb_ref,        # (256, 128) bf16 (81->128 lane-padded), (1, 128) f32
    out_ref,               # (1, 128)  f32  -- written once per batch
    v_ref,                 # (1, 1024) f32  -- VMEM scratch, resident over N tiles
):
    nt = pl.program_id(1)
    k, tn, c_in = x_ref.shape

    # --- conv1 / conv2: one big matmul each over all K*TN rows (MXU). ---
    # (K, TN, 18) -> (K*TN, 18) is a free leading-axis merge (TN % 16 == 0).
    x2 = x_ref[...].reshape(k * tn, c_in)
    h1 = jnp.dot(x2, w1_ref[...], preferred_element_type=jnp.float32)
    h1 = _leaky(h1 + b1_ref[...]).astype(jnp.bfloat16)            # (K*TN, 64)
    h2 = jnp.dot(h1, w2_ref[...], preferred_element_type=jnp.float32)

    # --- K-max on pre-activation values (bias + leaky deferred, exact). ---
    f = jnp.max(h2.reshape(k, tn, h2.shape[-1]), axis=0)          # (TN, 128) f32
    f = _leaky(f + b2_ref[...]).astype(jnp.bfloat16)

    # --- conv3 (pre-activation) + max over this tile's points. ---
    h3 = jnp.dot(f, w3_ref[...], preferred_element_type=jnp.float32)   # (TN, 1024)
    tile_max = jnp.max(h3, axis=0, keepdims=True)                      # (1, 1024)

    @pl.when(nt == 0)
    def _():
        v_ref[...] = tile_max

    @pl.when(nt != 0)
    def _():
        v_ref[...] = jnp.maximum(v_ref[...], tile_max)

    # --- head, fused into the last N-tile step of each batch. ---
    @pl.when(nt == pl.num_programs(1) - 1)
    def _():
        v = _leaky(v_ref[...] + b3_ref[...]).astype(jnp.bfloat16)       # deferred conv3 epilogue
        g1 = _leaky(
            jnp.dot(v, l1_ref[...], preferred_element_type=jnp.float32)
            + b4_ref[...]).astype(jnp.bfloat16)                          # (1, 512)
        g2 = _leaky(
            jnp.dot(g1, l2_ref[...], preferred_element_type=jnp.float32)
            + b5_ref[...]).astype(jnp.bfloat16)                          # (1, 256)
        out_ref[...] = (
            jnp.dot(g2, tw_ref[...], preferred_element_type=jnp.float32)
            + tb_ref[...])                                               # (1, 128)


# --------------------------------------------------------------------------
# Wrapper
# --------------------------------------------------------------------------
def _pick_row_tile(n, target=512):
    """Largest multiple of 16 <= target that divides n, else full n.

    16 = bf16 sublane packing: the x block's second-to-last dim must be a
    multiple of 16 (or the whole axis) so the in-kernel (K,TN,18)->(K*TN,18)
    reshape stays a free leading-axis merge.
    """
    if n <= target:
        return n
    t = (target // 16) * 16
    while t >= 16:
        if n % t == 0:
            return t
        t -= 16
    return n


def _const_spec(shape):
    nd = len(shape)
    return pl.BlockSpec(shape, lambda b, nt, _nd=nd: (0,) * _nd)


def _vmem_limit_bytes():
    # v5e/v6e: 128 MiB VMEM -> 96 MiB limit; v7x: 64 MiB per TC -> 48 MiB.
    try:
        cap = pltpu.get_tpu_info().vmem_capacity_bytes
    except Exception:
        cap = 64 * 1024 * 1024
    return int(min(cap * 3 // 4, 96 * 1024 * 1024))


@jax.jit
def transform_net_forward(x_nchw, params):
    """x_nchw: (B, 18, N, K) float32  ->  (B, 9, 9) float32."""
    B, C, N, K = x_nchw.shape
    assert C == 18
    TN = _pick_row_tile(N)
    NT = N // TN

    # One fused re-layout pass: (B, 18, N, K) f32 -> (B, K, N, 18) bf16, so the
    # neighbour axis is a plain leading VMEM axis and the K-max is a leading-
    # axis reduction.
    # TODO(synk): fuse this cast+transpose into the upstream graph-feature
    # producer so x lands in HBM already in this layout (biggest win on v5e).
    x = jnp.transpose(x_nchw.astype(jnp.bfloat16), (0, 3, 2, 1))

    # Fold BN scales into the weights in f32, then cast to bf16 (MXU operands).
    w1 = (params["w1"] * params["s1"]).astype(jnp.bfloat16)
    w2 = (params["w2"] * params["s2"]).astype(jnp.bfloat16)
    w3 = (params["w3"] * params["s3"]).astype(jnp.bfloat16)
    l1 = (params["l1"] * params["s4"]).astype(jnp.bfloat16)
    l2 = (params["l2"] * params["s5"]).astype(jnp.bfloat16)
    # Pad transform output 81 -> 128 lanes for an unmasked lane-dense store.
    pad = 128 - 81
    tw = jnp.pad(params["tw"], ((0, 0), (0, pad))).astype(jnp.bfloat16)
    tb = jnp.pad(params["tb"], ((0, 0), (0, pad)))

    consts = [w1, params["b1"], w2, params["b2"], w3, params["b3"],
              l1, params["b4"], l2, params["b5"], tw, tb]

    in_specs = [pl.BlockSpec((None, K, TN, C), lambda b, nt: (b, 0, nt, 0))]
    in_specs += [_const_spec(p.shape) for p in consts]

    out = pl.pallas_call(
        transform_net_kernel,
        out_shape=jax.ShapeDtypeStruct((B, 1, 128), jnp.float32),
        grid_spec=pltpu.PrefetchScalarGridSpec(
            num_scalar_prefetch=0,
            grid=(B, NT),
            in_specs=in_specs,
            out_specs=pl.BlockSpec((None, 1, 128), lambda b, nt: (b, 0, 0)),
            scratch_shapes=[pltpu.VMEM((1, 1024), jnp.float32)],
        ),
        compiler_params=pltpu.CompilerParams(
            # TODO(synk): on v7x with B == 1, split the N-tile axis across the
            # two TensorCores (partial-max outputs + final combine) instead of
            # relying on the B axis for megacore.
            dimension_semantics=("parallel", "arbitrary"),
            vmem_limit_bytes=_vmem_limit_bytes(),
        ),
    )(x, *consts)

    return out.reshape(B, 128)[:, :81].reshape(B, 9, 9)


# --------------------------------------------------------------------------
# Parameters (BN folded in eval mode) and pure-f32 reference
# --------------------------------------------------------------------------
def _fold_bn(gamma, beta, mean, var, eps=1e-5):
    scale = gamma / jnp.sqrt(var + eps)
    shift = beta - mean * scale
    return scale[None, :], shift[None, :]


def make_params(key):
    ks = jax.random.split(key, 16)

    def bn(k, c):
        k1, k2, k3, k4 = jax.random.split(k, 4)
        gamma = 1.0 + 0.1 * jax.random.normal(k1, (c,), jnp.float32)
        beta = 0.1 * jax.random.normal(k2, (c,), jnp.float32)
        mean = 0.1 * jax.random.normal(k3, (c,), jnp.float32)
        var = 0.5 + jax.random.uniform(k4, (c,), jnp.float32)
        return _fold_bn(gamma, beta, mean, var)

    s1, b1 = bn(ks[0], 64)
    s2, b2 = bn(ks[1], 128)
    s3, b3 = bn(ks[2], 1024)   # BN captured inside the conv3 Sequential
    s4, b4 = bn(ks[3], 512)    # re-bound self.bn3 = BatchNorm1d(512)
    s5, b5 = bn(ks[4], 256)    # bn4

    return dict(
        w1=0.1 * jax.random.normal(ks[5], (18, 64), jnp.float32),
        w2=0.05 * jax.random.normal(ks[6], (64, 128), jnp.float32),
        w3=0.05 * jax.random.normal(ks[7], (128, 1024), jnp.float32),
        l1=0.02 * jax.random.normal(ks[8], (1024, 512), jnp.float32),
        l2=0.02 * jax.random.normal(ks[9], (512, 256), jnp.float32),
        # PyTorch init is weight=0 / bias=identity(9x9); use a small random
        # weight here so the test actually exercises the final matmul path.
        tw=0.01 * jax.random.normal(ks[10], (256, 81), jnp.float32),
        tb=jnp.eye(9, dtype=jnp.float32).reshape(1, 81),
        s1=s1, b1=b1, s2=s2, b2=b2, s3=s3, b3=b3, s4=s4, b4=b4, s5=s5, b5=b5,
    )


def reference_forward(x_nchw, p):
    """Pure-f32 JAX mirror of the PyTorch module (eval-mode BN folded)."""
    B, C, N, K = x_nchw.shape
    x = jnp.transpose(x_nchw, (0, 2, 3, 1)).reshape(B, N * K, C)
    h1 = _leaky(x @ p["w1"] * p["s1"] + p["b1"])
    h2 = _leaky(h1 @ p["w2"] * p["s2"] + p["b2"])
    f = jnp.max(h2.reshape(B, N, K, 128), axis=2)
    h3 = _leaky(f @ p["w3"] * p["s3"] + p["b3"])
    v = jnp.max(h3, axis=1)
    g1 = _leaky(v @ p["l1"] * p["s4"] + p["b4"])
    g2 = _leaky(g1 @ p["l2"] * p["s5"] + p["b5"])
    t = g2 @ p["tw"] + p["tb"]
    return t.reshape(B, 9, 9)


if __name__ == "__main__":
    key = jax.random.PRNGKey(0)
    kx, kp = jax.random.split(key)

    B, C, N, K = 2, 18, 16, 8
    x = jax.random.normal(kx, (B, C, N, K), jnp.float32)
    params = make_params(kp)

    out = jax.block_until_ready(transform_net_forward(x, params))
    ref = reference_forward(x, params)

    assert out.shape == (B, 9, 9)
    # bf16 MXU operands (f32 accumulate) vs a pure-f32 reference -> loose tol.
    assert jnp.allclose(out, ref, atol=2e-2, rtol=2e-2), "mismatch vs JAX reference"
    print("KERNEL_OK")
</pallas_src>

<mosaic_0001>
module attributes {stable_mosaic.version = 11 : i64} {
  func.func @transform_net_kernel(%arg0: i32, %arg1: i32, %arg2: memref<1x8x16x18xbf16, #tpu.memory_space<vmem>>, %arg3: memref<18x64xbf16, #tpu.memory_space<vmem>>, %arg4: memref<1x64xf32, #tpu.memory_space<vmem>>, %arg5: memref<64x128xbf16, #tpu.memory_space<vmem>>, %arg6: memref<1x128xf32, #tpu.memory_space<vmem>>, %arg7: memref<128x1024xbf16, #tpu.memory_space<vmem>>, %arg8: memref<1x1024xf32, #tpu.memory_space<vmem>>, %arg9: memref<1024x512xbf16, #tpu.memory_space<vmem>>, %arg10: memref<1x512xf32, #tpu.memory_space<vmem>>, %arg11: memref<512x256xbf16, #tpu.memory_space<vmem>>, %arg12: memref<1x256xf32, #tpu.memory_space<vmem>>, %arg13: memref<256x128xbf16, #tpu.memory_space<vmem>>, %arg14: memref<1x128xf32, #tpu.memory_space<vmem>>, %arg15: memref<1x1x128xf32, #tpu.memory_space<vmem>>, %arg16: memref<1x1024xf32, #tpu.memory_space<vmem>>) attributes {dimension_semantics = [#tpu.dimension_semantics<parallel>, #tpu.dimension_semantics<arbitrary>], iteration_bounds = array<i64: 2, 1>, scalar_prefetch = 0 : i64, scratch_operands = 1 : i64, tpu.core_type = #tpu.core_type<tc>, window_params = [{transform_indices = @transform_0, window_bounds = array<i64: 1, 8, 16, 18>}, {pipeline_mode = #tpu.pipeline_mode<synchronous>, transform_indices = @transform_1, window_bounds = array<i64: 18, 64>}, {pipeline_mode = #tpu.pipeline_mode<synchronous>, transform_indices = @transform_2, window_bounds = array<i64: 1, 64>}, {pipeline_mode = #tpu.pipeline_mode<synchronous>, transform_indices = @transform_3, window_bounds = array<i64: 64, 128>}, {pipeline_mode = #tpu.pipeline_mode<synchronous>, transform_indices = @transform_4, window_bounds = array<i64: 1, 128>}, {pipeline_mode = #tpu.pipeline_mode<synchronous>, transform_indices = @transform_5, window_bounds = array<i64: 128, 1024>}, {pipeline_mode = #tpu.pipeline_mode<synchronous>, transform_indices = @transform_6, window_bounds = array<i64: 1, 1024>}, {pipeline_mode = #tpu.pipeline_mode<synchronous>, transform_indices = @transform_7, window_bounds = array<i64: 1024, 512>}, {pipeline_mode = #tpu.pipeline_mode<synchronous>, transform_indices = @transform_8, window_bounds = array<i64: 1, 512>}, {pipeline_mode = #tpu.pipeline_mode<synchronous>, transform_indices = @transform_9, window_bounds = array<i64: 512, 256>}, {pipeline_mode = #tpu.pipeline_mode<synchronous>, transform_indices = @transform_10, window_bounds = array<i64: 1, 256>}, {pipeline_mode = #tpu.pipeline_mode<synchronous>, transform_indices = @transform_11, window_bounds = array<i64: 256, 128>}, {pipeline_mode = #tpu.pipeline_mode<synchronous>, transform_indices = @transform_12, window_bounds = array<i64: 1, 128>}, {transform_indices = @transform_13, window_bounds = array<i64: 1, 1, 128>}]} {
    %c0 = arith.constant 0 : index
    %c0_0 = arith.constant 0 : index
    %c0_1 = arith.constant 0 : index
    %c0_2 = arith.constant 0 : index
    %0 = vector.load %arg2[%c0, %c0_0, %c0_1, %c0_2] : memref<1x8x16x18xbf16, #tpu.memory_space<vmem>>, vector<1x8x16x18xbf16>
    %1 = vector.shape_cast %0 : vector<1x8x16x18xbf16> to vector<8x16x18xbf16>
    %2 = vector.shape_cast %1 : vector<8x16x18xbf16> to vector<128x18xbf16>
    %c0_3 = arith.constant 0 : index
    %c0_4 = arith.constant 0 : index
    %3 = vector.load %arg3[%c0_3, %c0_4] : memref<18x64xbf16, #tpu.memory_space<vmem>>, vector<18x64xbf16>
    %cst = arith.constant dense<0.000000e+00> : vector<128x64xf32>
    %4 = tpu.matmul %2, %3, %cst {dimension_numbers = #tpu.dot_dimension_numbers<[1], [0], [0], [1], [0, 0, 1, 1], [], []>} : vector<128x18xbf16>, vector<18x64xbf16>, vector<128x64xf32> -> vector<128x64xf32>
    %c0_5 = arith.constant 0 : index
    %c0_6 = arith.constant 0 : index
    %5 = vector.load %arg4[%c0_5, %c0_6] : memref<1x64xf32, #tpu.memory_space<vmem>>, vector<1x64xf32>
    %6 = vector.broadcast %5 : vector<1x64xf32> to vector<128x64xf32>
    %7 = arith.addf %4, %6 : vector<128x64xf32>
    %cst_7 = arith.constant 2.000000e-01 : f32
    %8 = vector.broadcast %cst_7 : f32 to vector<128x64xf32>
    %9 = arith.mulf %8, %7 : vector<128x64xf32>
    %10 = arith.maximumf %7, %9 : vector<128x64xf32>
    %11 = arith.truncf %10 : vector<128x64xf32> to vector<128x64xbf16>
    %c0_8 = arith.constant 0 : index
    %c0_9 = arith.constant 0 : index
    %12 = vector.load %arg5[%c0_8, %c0_9] : memref<64x128xbf16, #tpu.memory_space<vmem>>, vector<64x128xbf16>
    %cst_10 = arith.constant dense<0.000000e+00> : vector<128x128xf32>
    %13 = tpu.matmul %11, %12, %cst_10 {dimension_numbers = #tpu.dot_dimension_numbers<[1], [0], [0], [1], [0, 0, 1, 1], [], []>} : vector<128x64xbf16>, vector<64x128xbf16>, vector<128x128xf32> -> vector<128x128xf32>
    %14 = vector.shape_cast %13 : vector<128x128xf32> to vector<8x16x128xf32>
    %cst_11 = arith.constant dense<0xFF800000> : vector<16x128xf32>
    %15 = vector.multi_reduction <maximumf>, %14, %cst_11 [0] : vector<8x16x128xf32> to vector<16x128xf32>
    %c0_12 = arith.constant 0 : index
    %c0_13 = arith.constant 0 : index
    %16 = vector.load %arg6[%c0_12, %c0_13] : memref<1x128xf32, #tpu.memory_space<vmem>>, vector<1x128xf32>
    %17 = vector.broadcast %16 : vector<1x128xf32> to vector<16x128xf32>
    %18 = arith.addf %15, %17 : vector<16x128xf32>
    %cst_14 = arith.constant 2.000000e-01 : f32
    %19 = vector.broadcast %cst_14 : f32 to vector<16x128xf32>
    %20 = arith.mulf %19, %18 : vector<16x128xf32>
    %21 = arith.maximumf %18, %20 : vector<16x128xf32>
    %22 = arith.truncf %21 : vector<16x128xf32> to vector<16x128xbf16>
    %c0_15 = arith.constant 0 : index
    %c0_16 = arith.constant 0 : index
    %23 = vector.load %arg7[%c0_15, %c0_16] : memref<128x1024xbf16, #tpu.memory_space<vmem>>, vector<128x1024xbf16>
    %cst_17 = arith.constant dense<0.000000e+00> : vector<16x1024xf32>
    %24 = tpu.matmul %22, %23, %cst_17 {dimension_numbers = #tpu.dot_dimension_numbers<[1], [0], [0], [1], [0, 0, 1, 1], [], []>} : vector<16x128xbf16>, vector<128x1024xbf16>, vector<16x1024xf32> -> vector<16x1024xf32>
    %cst_18 = arith.constant dense<0xFF800000> : vector<1024xf32>
    %25 = vector.multi_reduction <maximumf>, %24, %cst_18 [0] : vector<16x1024xf32> to vector<1024xf32>
    %26 = vector.shape_cast %25 : vector<1024xf32> to vector<1x1024xf32>
    %c0_i32 = arith.constant 0 : i32
    %27 = arith.cmpi eq, %arg1, %c0_i32 : i32
    %28 = arith.extui %27 : i1 to i32
    %c0_i32_19 = arith.constant 0 : i32
    %29 = arith.cmpi ne, %28, %c0_i32_19 : i32
    scf.if %29 {
      %c0_24 = arith.constant 0 : index
      %c0_25 = arith.constant 0 : index
      %36 = vector.load %arg16[%c0_24, %c0_25] : memref<1x1024xf32, #tpu.memory_space<vmem>>, vector<1x1024xf32>
      tpu.vector_store %arg16[%c0_24, %c0_25], %26 {strides = array<i32>} : memref<1x1024xf32, #tpu.memory_space<vmem>>, vector<1x1024xf32>,
    } else {
    }
    %c0_i32_20 = arith.constant 0 : i32
    %30 = arith.cmpi ne, %arg1, %c0_i32_20 : i32
    %31 = arith.extui %30 : i1 to i32
    %c0_i32_21 = arith.constant 0 : i32
    %32 = arith.cmpi ne, %31, %c0_i32_21 : i32
    scf.if %32 {
      %c0_24 = arith.constant 0 : index
      %c0_25 = arith.constant 0 : index
      %36 = vector.load %arg16[%c0_24, %c0_25] : memref<1x1024xf32, #tpu.memory_space<vmem>>, vector<1x1024xf32>
      %37 = arith.maximumf %36, %26 : vector<1x1024xf32>
      %c0_26 = arith.constant 0 : index
      %c0_27 = arith.constant 0 : index
      %38 = vector.load %arg16[%c0_26, %c0_27] : memref<1x1024xf32, #tpu.memory_space<vmem>>, vector<1x1024xf32>
      tpu.vector_store %arg16[%c0_26, %c0_27], %37 {strides = array<i32>} : memref<1x1024xf32, #tpu.memory_space<vmem>>, vector<1x1024xf32>,
    } else {
    }
    %c0_i32_22 = arith.constant 0 : i32
    %33 = arith.cmpi eq, %arg1, %c0_i32_22 : i32
    %34 = arith.extui %33 : i1 to i32
    %c0_i32_23 = arith.constant 0 : i32
    %35 = arith.cmpi ne, %34, %c0_i32_23 : i32
    scf.if %35 {
      %c0_24 = arith.constant 0 : index
      %c0_25 = arith.constant 0 : index
      %36 = vector.load %arg16[%c0_24, %c0_25] : memref<1x1024xf32, #tpu.memory_space<vmem>>, vector<1x1024xf32>
      %c0_26 = arith.constant 0 : index
      %c0_27 = arith.constant 0 : index
      %37 = vector.load %arg8[%c0_26, %c0_27] : memref<1x1024xf32, #tpu.memory_space<vmem>>, vector<1x1024xf32>
      %38 = arith.addf %36, %37 : vector<1x1024xf32>
      %cst_28 = arith.constant 2.000000e-01 : f32
      %39 = vector.broadcast %cst_28 : f32 to vector<1x1024xf32>
      %40 = arith.mulf %39, %38 : vector<1x1024xf32>
      %41 = arith.maximumf %38, %40 : vector<1x1024xf32>
      %42 = arith.truncf %41 : vector<1x1024xf32> to vector<1x1024xbf16>
      %c0_29 = arith.constant 0 : index
      %c0_30 = arith.constant 0 : index
      %43 = vector.load %arg9[%c0_29, %c0_30] : memref<1024x512xbf16, #tpu.memory_space<vmem>>, vector<1024x512xbf16>
      %cst_31 = arith.constant dense<0.000000e+00> : vector<1x512xf32>
      %44 = tpu.matmul %42, %43, %cst_31 {dimension_numbers = #tpu.dot_dimension_numbers<[1], [0], [0], [1], [0, 0, 1, 1], [], []>} : vector<1x1024xbf16>, vector<1024x512xbf16>, vector<1x512xf32> -> vector<1x512xf32>
      %c0_32 = arith.constant 0 : index
      %c0_33 = arith.constant 0 : index
      %45 = vector.load %arg10[%c0_32, %c0_33] : memref<1x512xf32, #tpu.memory_space<vmem>>, vector<1x512xf32>
      %46 = arith.addf %44, %45 : vector<1x512xf32>
      %cst_34 = arith.constant 2.000000e-01 : f32
      %47 = vector.broadcast %cst_34 : f32 to vector<1x512xf32>
      %48 = arith.mulf %47, %46 : vector<1x512xf32>
      %49 = arith.maximumf %46, %48 : vector<1x512xf32>
      %50 = arith.truncf %49 : vector<1x512xf32> to vector<1x512xbf16>
      %c0_35 = arith.constant 0 : index
      %c0_36 = arith.constant 0 : index
      %51 = vector.load %arg11[%c0_35, %c0_36] : memref<512x256xbf16, #tpu.memory_space<vmem>>, vector<512x256xbf16>
      %cst_37 = arith.constant dense<0.000000e+00> : vector<1x256xf32>
      %52 = tpu.matmul %50, %51, %cst_37 {dimension_numbers = #tpu.dot_dimension_numbers<[1], [0], [0], [1], [0, 0, 1, 1], [], []>} : vector<1x512xbf16>, vector<512x256xbf16>, vector<1x256xf32> -> vector<1x256xf32>
      %c0_38 = arith.constant 0 : index
      %c0_39 = arith.constant 0 : index
      %53 = vector.load %arg12[%c0_38, %c0_39] : memref<1x256xf32, #tpu.memory_space<vmem>>, vector<1x256xf32>
      %54 = arith.addf %52, %53 : vector<1x256xf32>
      %cst_40 = arith.constant 2.000000e-01 : f32
      %55 = vector.broadcast %cst_40 : f32 to vector<1x256xf32>
      %56 = arith.mulf %55, %54 : vector<1x256xf32>
      %57 = arith.maximumf %54, %56 : vector<1x256xf32>
      %58 = arith.truncf %57 : vector<1x256xf32> to vector<1x256xbf16>
      %c0_41 = arith.constant 0 : index
      %c0_42 = arith.constant 0 : index
      %59 = vector.load %arg13[%c0_41, %c0_42] : memref<256x128xbf16, #tpu.memory_space<vmem>>, vector<256x128xbf16>
      %cst_43 = arith.constant dense<0.000000e+00> : vector<1x128xf32>
      %60 = tpu.matmul %58, %59, %cst_43 {dimension_numbers = #tpu.dot_dimension_numbers<[1], [0], [0], [1], [0, 0, 1, 1], [], []>} : vector<1x256xbf16>, vector<256x128xbf16>, vector<1x128xf32> -> vector<1x128xf32>
      %c0_44 = arith.constant 0 : index
      %c0_45 = arith.constant 0 : index
      %61 = vector.load %arg14[%c0_44, %c0_45] : memref<1x128xf32, #tpu.memory_space<vmem>>, vector<1x128xf32>
      %62 = arith.addf %60, %61 : vector<1x128xf32>
      %c0_46 = arith.constant 0 : index
      %c0_47 = arith.constant 0 : index
      %c0_48 = arith.constant 0 : index
      %63 = vector.load %arg15[%c0_46, %c0_47, %c0_48] : memref<1x1x128xf32, #tpu.memory_space<vmem>>, vector<1x1x128xf32>
      %64 = vector.shape_cast %63 : vector<1x1x128xf32> to vector<1x128xf32>
      %65 = vector.shape_cast %62 : vector<1x128xf32> to vector<1x1x128xf32>
      tpu.vector_store %arg15[%c0_46, %c0_47, %c0_48], %65 {strides = array<i32>} : memref<1x1x128xf32, #tpu.memory_space<vmem>>, vector<1x1x128xf32>,
    } else {
    }
    return
  }
  func.func @transform_0(%arg0: i32, %arg1: i32) -> (i32, i32, i32, i32) {
    %c0_i32 = arith.constant 0 : i32
    %c0_i32_0 = arith.constant 0 : i32
    %c0_i32_1 = arith.constant 0 : i32
    return %arg0, %c0_i32, %arg1, %c0_i32_0 : i32, i32, i32, i32
  }
  func.func @transform_1(%arg0: i32, %arg1: i32) -> (i32, i32) {
    %c0_i32 = arith.constant 0 : i32
    %c0_i32_0 = arith.constant 0 : i32
    %c0_i32_1 = arith.constant 0 : i32
    return %c0_i32, %c0_i32_0 : i32, i32
  }
  func.func @transform_2(%arg0: i32, %arg1: i32) -> (i32, i32) {
    %c0_i32 = arith.constant 0 : i32
    %c0_i32_0 = arith.constant 0 : i32
    %c0_i32_1 = arith.constant 0 : i32
    return %c0_i32, %c0_i32_0 : i32, i32
  }
  func.func @transform_3(%arg0: i32, %arg1: i32) -> (i32, i32) {
    %c0_i32 = arith.constant 0 : i32
    %c0_i32_0 = arith.constant 0 : i32
    %c0_i32_1 = arith.constant 0 : i32
    return %c0_i32, %c0_i32_0 : i32, i32
  }
  func.func @transform_4(%arg0: i32, %arg1: i32) -> (i32, i32) {
    %c0_i32 = arith.constant 0 : i32
    %c0_i32_0 = arith.constant 0 : i32
    %c0_i32_1 = arith.constant 0 : i32
    return %c0_i32, %c0_i32_0 : i32, i32
  }
  func.func @transform_5(%arg0: i32, %arg1: i32) -> (i32, i32) {
    %c0_i32 = arith.constant 0 : i32
    %c0_i32_0 = arith.constant 0 : i32
    %c0_i32_1 = arith.constant 0 : i32
    return %c0_i32, %c0_i32_0 : i32, i32
  }
  func.func @transform_6(%arg0: i32, %arg1: i32) -> (i32, i32) {
    %c0_i32 = arith.constant 0 : i32
    %c0_i32_0 = arith.constant 0 : i32
    %c0_i32_1 = arith.constant 0 : i32
    return %c0_i32, %c0_i32_0 : i32, i32
  }
  func.func @transform_7(%arg0: i32, %arg1: i32) -> (i32, i32) {
    %c0_i32 = arith.constant 0 : i32
    %c0_i32_0 = arith.constant 0 : i32
    %c0_i32_1 = arith.constant 0 : i32
    return %c0_i32, %c0_i32_0 : i32, i32
  }
  func.func @transform_8(%arg0: i32, %arg1: i32) -> (i32, i32) {
    %c0_i32 = arith.constant 0 : i32
    %c0_i32_0 = arith.constant 0 : i32
    %c0_i32_1 = arith.constant 0 : i32
    return %c0_i32, %c0_i32_0 : i32, i32
  }
  func.func @transform_9(%arg0: i32, %arg1: i32) -> (i32, i32) {
    %c0_i32 = arith.constant 0 : i32
    %c0_i32_0 = arith.constant 0 : i32
    %c0_i32_1 = arith.constant 0 : i32
    return %c0_i32, %c0_i32_0 : i32, i32
  }
  func.func @transform_10(%arg0: i32, %arg1: i32) -> (i32, i32) {
    %c0_i32 = arith.constant 0 : i32
    %c0_i32_0 = arith.constant 0 : i32
    %c0_i32_1 = arith.constant 0 : i32
    return %c0_i32, %c0_i32_0 : i32, i32
  }
  func.func @transform_11(%arg0: i32, %arg1: i32) -> (i32, i32) {
    %c0_i32 = arith.constant 0 : i32
    %c0_i32_0 = arith.constant 0 : i32
    %c0_i32_1 = arith.constant 0 : i32
    return %c0_i32, %c0_i32_0 : i32, i32
  }
  func.func @transform_12(%arg0: i32, %arg1: i32) -> (i32, i32) {
    %c0_i32 = arith.constant 0 : i32
    %c0_i32_0 = arith.constant 0 : i32
    %c0_i32_1 = arith.constant 0 : i32
    return %c0_i32, %c0_i32_0 : i32, i32
  }
  func.func @transform_13(%arg0: i32, %arg1: i32) -> (i32, i32, i32) {
    %c0_i32 = arith.constant 0 : i32
    %c0_i32_0 = arith.constant 0 : i32
    %c0_i32_1 = arith.constant 0 : i32
    return %arg0, %c0_i32, %c0_i32_0 : i32, i32, i32
  }
}

</mosaic_0001>

<bundles_post_ra>
// kernel: transform_net_forward.1
= control target key start
LH: loop header
LB: loop body
LE: loop exit
PB: predicated region body
PF: predicated region fallthrough
CT: control target
= control target key end

     0   :  { %s5462_s25 = smov 0   ;;  %s5464_s26 = smov 0   ;;  %s6878_s0 = inlined_call_operand.vmem [shape: bf16[2,8,16,18], index: 0, kind: input, shape index: {}]   ;;  %s6879_s1 = inlined_call_operand.vmem [shape: bf16[18,64], index: 1, kind: input, shape index: {}]   ;;  %s6880_s2 = inlined_call_operand.vmem [shape: f32[1,64], index: 2, kind: input, shape index: {}]   ;;  %s6881_s3 = inlined_call_operand.vmem [shape: bf16[64,128], index: 3, kind: input, shape index: {}]   ;;  %s6882_s4 = inlined_call_operand.vmem [shape: f32[1,128], index: 4, kind: input, shape index: {}]   ;;  %s6883_s5 = inlined_call_operand.vmem [shape: bf16[128,1024], index: 5, kind: input, shape index: {}]   ;;  %s6884_s6 = inlined_call_operand.vmem [shape: f32[1,1024], index: 6, kind: input, shape index: {}]   ;;  %s6885_s7 = inlined_call_operand.vmem [shape: bf16[1024,512], index: 7, kind: input, shape index: {}]   ;;  %s6886_s8 = inlined_call_operand.vmem [shape: f32[1,512], index: 8, kind: input, shape index: {}]   ;;  %s6887_s9 = inlined_call_operand.vmem [shape: bf16[512,256], index: 9, kind: input, shape index: {}]   ;;  %s6888_s10 = inlined_call_operand.vmem [shape: f32[1,256], index: 10, kind: input, shape index: {}]   ;;  %s6889_s11 = inlined_call_operand.vmem [shape: bf16[256,128], index: 11, kind: input, shape index: {}]   ;;  %s6890_s12 = inlined_call_operand.vmem [shape: f32[1,128], index: 12, kind: input, shape index: {}]   ;;  %s6891_s13 = inlined_call_operand.vmem [shape: f32[2,1,128], index: 13, kind: output, shape index: {}]  }
   0x1   :  { %s5466_s27 = smov 0  }
   0x2 LB: > { %s35_s28 = sadd.s32 1, %s5384_s26  ;;  %p4303_p0 = scmp.ge.s32.totalorder %s5388_s27, 1  ;;  %s5388_s27 = sphi %s5466_s27, %s23_s27   ;;  %s5384_s26 = sphi %s5464_s26, %s6893_s26   ;;  %s5380_s25 = sphi %s5462_s25, %s6892_s25  }
   0x3   : > { %p37_p1 = scmp.ge.s32.totalorder %s35_s28, 2  ;;  %p406_p2 = scmp.lt.s32.totalorder %s5388_s27, 3 }
   0x5   : > { %s6895_s28 = smov (%p37_p1, %s35_s28), 0  ;;  %p407_p3 = pnand %p4303_p0, %p406_p2 }
   0x6   : > { %p453_p4 = scmp.lt.s32.totalorder (!%p407_p3), %s5380_s25, 1 }
   0x7   : > { %410 = sbr.rel (%p407_p3) target bundleno = 1532 (0x5fc), region = 72 }
   0xc   : > { %v4856_v0 = vld [vmem:[%s6879_s1 + $0x8] ss:$0 sps:$4 sm:$0x11]   ;;  %vm566_vm0 = vcmask 1040384   ;;  %v4857_v1 = vld [vmem:[%s6879_s1] sm:$0xff]   ;;  %s6897_s25 = smov (!%p453_p4, %s5380_s25), 1 }
   0xd   : > { %4829 = vmatprep.subr.msk.bf16.mxu0 %vm566_vm0, %v4856_v0  ;;  %v568_v2 = vsel %vm566_vm0, %v4856_v0, 0  ;;  %s4740_s16 = sshll.u32 %s6897_s25, 6  ;;  %vm541_vm1 = vcmask 146432   ;;  %v4866_v11 = vld [vmem:[%s6881_s3 + $0x18] sm:$0xff]   ;;  %v4867_v12 = vld [vmem:[%s6881_s3 + $0x10] sm:$0xff]   ;;  %v4868_v13 = vld [vmem:[%s6881_s3 + $0x8] sm:$0xff]   ;;  %s464_s23 = scalar_lea.vmem %s6891_s13, %s6897_s25 }
   0xe   : > { %4786 = vmatpush3.bf16.msra.mxu0 %v568_v2  ;;  %s460_s19 = scalar_lea.vmem %s6878_s0, %s4740_s16  ;;  %4805 = vmatprep.subr.bf16.mxu1 %v4866_v11  ;;  %v4869_v14 = vld [vmem:[%s6881_s3] sm:$0xff]   ;;  %vm739_vm2 = vcmask 523264  }
   0xf   : > { %4787 = vmatprep.subr.bf16.mxu0 %v4857_v1  ;;  %v4858_v3 = vld [vmem:[%s460_s19] sm:$0xff]   ;;  %v4859_v4 = vld [vmem:[%s460_s19 + $0x8] sm:$0xff]   ;;  %v4860_v5 = vld [vmem:[%s460_s19 + $0x10] sm:$0xff]   ;;  %4806 = vmatpush3.bf16.msra.mxu1 %v4866_v11 }
  0x10   : > { %4789 = vmatprep.mubr.msk.bf16.mxu0 %vm541_vm1, %v4858_v3  ;;  %v4861_v6 = vld [vmem:[%s460_s19 + $0x18] sm:$0xff]   ;;  %v4862_v7 = vld [vmem:[%s460_s19 + $0x20] sm:$0xff]   ;;  %v4863_v8 = vld [vmem:[%s460_s19 + $0x28] sm:$0xff]   ;;  %4807 = vmatprep.subr.bf16.mxu1 %v4867_v12 }
  0x11   : > { %v4864_v9 = vld [vmem:[%s460_s19 + $0x30] sm:$0xff]   ;;  %v4865_v10 = vld [vmem:[%s460_s19 + $0x38] sm:$0xff]   ;;  %v5515_v16 = vld [vmem:[%s6880_s2] ss:$0 sm:$0xff] }
  0x12   : > { %4788 = vmatpush3.bf16.msra.mxu0 %v4857_v1 }
  0x13   : > { %4808 = vmatpush3.bf16.msra.mxu1 %v4867_v12 }
  0x14   : > { %4809 = vmatprep.subr.bf16.mxu1 %v4868_v13 }
  0x15   : > { %4790 = vmatmul.mubr.msk.bf16.vlgmr.msra.gmra.mxu0 %vm541_vm1, %v4859_v4 }
  0x16   : > { %4793 = vmatprep.mubr.msk.bf16.mxu0 %vm541_vm1, %v4860_v5 }
  0x17   : > { %4810 = vmatpush3.bf16.msra.mxu1 %v4868_v13 }
  0x18   : > { %4811 = vmatprep.subr.bf16.mxu1 %v4869_v14 }
  0x1b   : > { %4812 = vmatpush3.bf16.msra.mxu1 %v4869_v14 }
  0x1d   : > { %4794 = vmatmul.mubr.msk.bf16.gmra.mxu0 %vm541_vm1, %v4861_v6 }
  0x1e   : > { %4797 = vmatprep.mubr.msk.bf16.mxu0 %vm541_vm1, %v4862_v7 }
  0x25   : > { %4798 = vmatmul.mubr.msk.bf16.gmra.mxu0 %vm541_vm1, %v4863_v8 }
  0x26   : > { %4801 = vmatprep.mubr.msk.bf16.mxu0 %vm541_vm1, %v4864_v9 }
  0x2d   : > { %4802 = vmatmul.mubr.msk.bf16.gmra.mxu0 %vm541_vm1, %v4865_v10 }
  0xd5   : > { %v4791_v15 = vpop.f32.mrf.mxu0 }
  0xd6   : > { %v613_v19 = vadd.f32 %v4791_v15, %v5515_v16 }
  0xd7   : > { %v604_v17 = vpop.f32.mrf.mxu0 }
  0xd8   : > { %v605_v18 = vadd.f32 %v5515_v16, %v604_v17  ;;  %v669_v26 = vmul.f32 0.2, %v613_v19 }
  0xd9   : > { %v4792_v20 = vpop.f32.mrf.mxu0 }
  0xda   : > { %v616_v21 = vadd.f32 %v4792_v20, %v5515_v16  ;;  %v667_v23 = vmul.f32 0.2, %v605_v18  ;;  %v685_v34 = vmax.f32 %v613_v19, %v669_v26  ;;  %v946_v26 = vld [vmem:[%s6883_s5 + $0x1c8] sm:$0xff] }
  0xdb   : > { %v607_v22 = vpop.f32.mrf.mxu0 }
  0xdc   : > { %v670_v24 = vmul.f32 0.2, %v616_v21  ;;  %v608_v25 = vadd.f32 %v5515_v16, %v607_v22  ;;  %v683_v31 = vmax.f32 %v605_v18, %v667_v23 }
  0xdd   : > { %v4795_v27 = vpop.f32.mrf.mxu0 }
  0xde   : > { %v668_v28 = vmul.f32 0.2, %v608_v25  ;;  %v686_v29 = vmax.f32 %v616_v21, %v670_v24  ;;  %v629_v35 = vadd.f32 %v4795_v27, %v5515_v16 }
  0xdf   : > { %v620_v30 = vpop.f32.mrf.mxu0 }
  0xe0   : > { %v684_v32 = vmax.f32 %v608_v25, %v668_v28  ;;  %v621_v33 = vadd.f32 %v5515_v16, %v620_v30  ;;  %v700_v39 = vpack.c.bf16 %v686_v29, %v685_v34  ;;  %v673_v44 = vmul.f32 0.2, %v629_v35  ;;  %v949_v25 = vld [vmem:[%s6883_s5 + $0x1e0] sm:$0xff]  ;;  %v950_v28 = vld [vmem:[%s6883_s5 + $0x1e8] sm:$0xff] }
  0xe1   : > { %v4796_v36 = vpop.f32.mrf.mxu0  ;;  %v4396_v30 = vcombine.low %v946_v26, %v950_v28  ;;  %v938_v34 = vld [vmem:[%s6883_s5 + $0x188] sm:$0xff] }
  0xe2   : > { %v632_v37 = vadd.f32 %v4796_v36, %v5515_v16  ;;  %v699_v38 = vpack.c.bf16 %v684_v32, %v683_v31  ;;  %v671_v41 = vmul.f32 0.2, %v621_v33  ;;  %v689_v52 = vmax.f32 %v629_v35, %v673_v44  ;;  %v937_v32 = vld [vmem:[%s6883_s5 + $0x180] sm:$0xff]  ;;  %v942_v36 = vld [vmem:[%s6883_s5 + $0x1a8] sm:$0xff] }
  0xe3   : > { %v623_v40 = vpop.f32.mrf.mxu0  ;;  %v4397_v31 = vcombine.high %v946_v26, %v950_v28  ;;  %v934_v44 = vld [vmem:[%s6883_s5 + $0x168] sm:$0xff]  ;;  %v5650_v26 = vld [vmem:[%s6883_s5 + $0x1d8] sm:$0xff] }
  0xe4   : > { %v674_v42 = vmul.f32 0.2, %v632_v37  ;;  %v624_v43 = vadd.f32 %v5515_v16, %v623_v40  ;;  %4813 = vmatprep.mubr.msk.bf16.mxu1 %vm739_vm2, %v699_v38  ;;  %v687_v49 = vmax.f32 %v621_v33, %v671_v41  ;;  %v941_v33 = vld [vmem:[%s6883_s5 + $0x1a0] sm:$0xff]  ;;  %v4388_v38 = vcombine.low %v938_v34, %v942_v36  ;;  %v952_v28 = vld [vmem:[%s6883_s5 + $0x1f8] sm:$0xff] }
  0xe5   : > { %v4799_v45 = vpop.f32.mrf.mxu0  ;;  %4814 = vmatmul.mubr.msk.bf16.vlgmr.msra.gmra.mxu1 %vm739_vm2, %v700_v39  ;;  %1316 = vmatprep.subr.bf16.mxu1 %v4397_v31  ;;  %v4387_v35 = vcombine.high %v937_v32, %v941_v33  ;;  %v4389_v39 = vcombine.high %v938_v34, %v942_v36  ;;  %v929_v40 = vld [vmem:[%s6883_s5 + $0x140] sm:$0xff]  ;;  %v4401_v31 = vcombine.high %v5650_v26, %v952_v28 }
  0xe6   : > { %v672_v46 = vmul.f32 0.2, %v624_v43  ;;  %v690_v47 = vmax.f32 %v632_v37, %v674_v42  ;;  %v645_v53 = vadd.f32 %v4799_v45, %v5515_v16  ;;  %1317 = vmatpush1.bf16.msra.mxu1 %v4396_v30  ;;  %v4386_v37 = vcombine.low %v937_v32, %v941_v33  ;;  %v933_v41 = vld [vmem:[%s6883_s5 + $0x160] sm:$0xff]  ;;  %v930_v42 = vld [vmem:[%s6883_s5 + $0x148] sm:$0xff] }
  0xe7   : > { %v636_v48 = vpop.f32.mrf.mxu0  ;;  %1318 = vmatprep.subr.bf16.mxu1 %v4389_v39  ;;  %v4378_v45 = vcombine.low %v929_v40, %v933_v41  ;;  %v4400_v30 = vcombine.low %v5650_v26, %v952_v28  ;;  %v5390_v32 = vmov 0  }
  0xe8   : > { %v688_v50 = vmax.f32 %v624_v43, %v672_v46  ;;  %v637_v51 = vadd.f32 %v5515_v16, %v636_v48  ;;  %v702_v57 = vpack.c.bf16 %v690_v47, %v689_v52  ;;  %v677_v62 = vmul.f32 0.2, %v645_v53  ;;  %v921_v48 = vld [vmem:[%s6883_s5 + $0x100] sm:$0xff]  ;;  %v926_v52 = vld [vmem:[%s6883_s5 + $0x128] sm:$0xff]  ;;  %1305 = vmatprep.mubr.bf16.mxu0 %v5390_v32 }
  0xe9   : > { %v4800_v54 = vpop.f32.mrf.mxu0  ;;  %v4379_v43 = vcombine.high %v929_v40, %v933_v41  ;;  %v4380_v46 = vcombine.low %v930_v42, %v934_v44  ;;  %v4381_v47 = vcombine.high %v930_v42, %v934_v44 }
  0xea   : > { %v701_v55 = vpack.c.bf16 %v688_v50, %v687_v49  ;;  %v648_v56 = vadd.f32 %v4800_v54, %v5515_v16  ;;  %v675_v59 = vmul.f32 0.2, %v637_v51  ;;  %v693_v6 = vmax.f32 %v645_v53, %v677_v62  ;;  %1319 = vmatpush1.bf16.msra.mxu1 %v4388_v38  ;;  %v925_v49 = vld [vmem:[%s6883_s5 + $0x120] sm:$0xff]  ;;  %v922_v50 = vld [vmem:[%s6883_s5 + $0x108] sm:$0xff] }
  0xeb   : > { %v639_v58 = vpop.f32.mrf.mxu0  ;;  %1320 = vmatprep.subr.bf16.mxu1 %v4381_v47  ;;  %v4370_v53 = vcombine.low %v921_v48, %v925_v49  ;;  %v4372_v54 = vcombine.low %v922_v50, %v926_v52 }
  0xec   : > { %v678_v60 = vmul.f32 0.2, %v648_v56  ;;  %v640_v61 = vadd.f32 %v5515_v16, %v639_v58  ;;  %4817 = vmatprep.mubr.msk.bf16.mxu1 %vm739_vm2, %v701_v55  ;;  %v691_v3 = vmax.f32 %v637_v51, %v675_v59  ;;  %v4371_v51 = vcombine.high %v921_v48, %v925_v49  ;;  %v914_v58 = vld [vmem:[%s6883_s5 + $0xc8] sm:$0xff] }
  0xed   : > { %v4803_v63 = vpop.f32.mrf.mxu0  ;;  %4818 = vmatmul.mubr.msk.bf16.gmra.mxu1 %vm739_vm2, %v702_v57  ;;  %v4373_v55 = vcombine.high %v922_v50, %v926_v52  ;;  %v917_v57 = vld [vmem:[%s6883_s5 + $0xe0] sm:$0xff] }
  0xee   : > { %v676_v0 = vmul.f32 0.2, %v640_v61  ;;  %v694_v1 = vmax.f32 %v648_v56, %v678_v60  ;;  %v661_v7 = vadd.f32 %v4803_v63, %v5515_v16  ;;  %1321 = vmatpush1.bf16.msra.mxu1 %v4380_v46  ;;  %v913_v56 = vld [vmem:[%s6883_s5 + $0xc0] sm:$0xff]  ;;  %v918_v60 = vld [vmem:[%s6883_s5 + $0xe8] sm:$0xff] }
  0xef   : > { %v652_v2 = vpop.f32.mrf.mxu0  ;;  %1322 = vmatprep.subr.bf16.mxu1 %v4373_v55  ;;  %v4363_v59 = vcombine.high %v913_v56, %v917_v57  ;;  %v4364_v62 = vcombine.low %v914_v58, %v918_v60  ;;  %v4365_v63 = vcombine.high %v914_v58, %v918_v60  ;;  %v4337_v55 = vld [vmem:[%s6882_s4] ss:$0 sm:$0xff] }
  0xf0   : > { %v692_v4 = vmax.f32 %v640_v61, %v676_v0  ;;  %v653_v5 = vadd.f32 %v5515_v16, %v652_v2  ;;  %v704_v11 = vpack.c.bf16 %v694_v1, %v693_v6  ;;  %v681_v17 = vmul.f32 0.2, %v661_v7  ;;  %v905_v0 = vld [vmem:[%s6883_s5 + $0x80] sm:$0xff]  ;;  %v906_v2 = vld [vmem:[%s6883_s5 + $0x88] sm:$0xff] }
  0xf1   : > { %v4804_v8 = vpop.f32.mrf.mxu0  ;;  %v4362_v61 = vcombine.low %v913_v56, %v917_v57  ;;  %v909_v1 = vld [vmem:[%s6883_s5 + $0xa0] sm:$0xff] }
  0xf2   : > { %v703_v9 = vpack.c.bf16 %v692_v4, %v691_v3  ;;  %v664_v10 = vadd.f32 %v4804_v8, %v5515_v16  ;;  %v679_v13 = vmul.f32 0.2, %v653_v5  ;;  %v697_v22 = vmax.f32 %v661_v7, %v681_v17  ;;  %1323 = vmatpush1.bf16.msra.mxu1 %v4372_v54  ;;  %v910_v4 = vld [vmem:[%s6883_s5 + $0xa8] sm:$0xff]  ;;  %v897_v8 = vld [vmem:[%s6883_s5 + $0x40] sm:$0xff] }
  0xf3   : > { %v655_v12 = vpop.f32.mrf.mxu0  ;;  %1324 = vmatprep.subr.bf16.mxu1 %v4365_v63  ;;  %v4355_v3 = vcombine.high %v905_v0, %v909_v1  ;;  %v4356_v6 = vcombine.low %v906_v2, %v910_v4  ;;  %v4357_v7 = vcombine.high %v906_v2, %v910_v4  ;;  %v889_v17 = vld [vmem:[%s6883_s5] sm:$0xff]  ;;  %v939_v4 = vld [vmem:[%s6883_s5 + $0x190] sm:$0xff] }
  0xf4   : > { %v682_v14 = vmul.f32 0.2, %v664_v10  ;;  %v656_v15 = vadd.f32 %v5515_v16, %v655_v12  ;;  %4821 = vmatprep.mubr.msk.bf16.mxu1 %vm739_vm2, %v703_v9  ;;  %v695_v20 = vmax.f32 %v653_v5, %v679_v13  ;;  %v945_v16 = vld [vmem:[%s6883_s5 + $0x1c0] sm:$0xff]  ;;  %v4354_v5 = vcombine.low %v905_v0, %v909_v1  ;;  %v902_v12 = vld [vmem:[%s6883_s5 + $0x68] sm:$0xff] }
  0xf5   : > { %4822 = vmatmul.mubr.msk.bf16.gmra.mxu1 %vm739_vm2, %v704_v11  ;;  %v4395_v27 = vcombine.high %v945_v16, %v949_v25  ;;  %v4394_v29 = vcombine.low %v945_v16, %v949_v25  ;;  %v901_v9 = vld [vmem:[%s6883_s5 + $0x60] sm:$0xff]  ;;  %v5640_v16 = vld [vmem:[%s6883_s5 + $0x1d0] sm:$0xff] }
  0xf6   : > { %v680_v18 = vmul.f32 0.2, %v656_v15  ;;  %v698_v19 = vmax.f32 %v664_v10, %v682_v14  ;;  %1325 = vmatpush1.bf16.msra.mxu1 %v4364_v62  ;;  %v898_v10 = vld [vmem:[%s6883_s5 + $0x48] sm:$0xff]  ;;  %v4347_v11 = vcombine.high %v897_v8, %v901_v9  ;;  %v4346_v13 = vcombine.low %v897_v8, %v901_v9  ;;  %v5645_v25 = vld [vmem:[%s6883_s5 + $0x1f0] sm:$0xff] }
  0xf7   : > { %1273 = vmatprep.subr.bf16.mxu0 %v4395_v27  ;;  %1326 = vmatprep.subr.bf16.mxu1 %v4357_v7  ;;  %v4348_v14 = vcombine.low %v898_v10, %v902_v12  ;;  %v4399_v27 = vcombine.high %v5640_v16, %v5645_v25  ;;  %v944_v7 = vld [vmem:[%s6883_s5 + $0x1b8] sm:$0xff] }
  0xf8   : > { %v696_v21 = vmax.f32 %v656_v15, %v680_v18  ;;  %v706_v24 = vpack.c.bf16 %v698_v19, %v697_v22  ;;  %1274 = vmatpush1.bf16.msra.mxu0 %v4394_v29  ;;  %v4349_v15 = vcombine.high %v898_v10, %v902_v12  ;;  %v893_v18 = vld [vmem:[%s6883_s5 + $0x20] sm:$0xff]  ;;  %v890_v19 = vld [vmem:[%s6883_s5 + $0x8] sm:$0xff]  ;;  %v4398_v29 = vcombine.low %v5640_v16, %v5645_v25  ;;  %v928_v16 = vld [vmem:[%s6883_s5 + $0x138] sm:$0xff] }
  0xf9   : > { %1275 = vmatprep.subr.bf16.mxu0 %v4387_v35  ;;  %v4338_v22 = vcombine.low %v889_v17, %v893_v18 }
  0xfa   : > { %v705_v23 = vpack.c.bf16 %v696_v21, %v695_v20  ;;  %1327 = vmatpush1.bf16.msra.mxu1 %v4356_v6  ;;  %v4339_v20 = vcombine.high %v889_v17, %v893_v18  ;;  %v894_v21 = vld [vmem:[%s6883_s5 + $0x28] sm:$0xff]  ;;  %v940_v6 = vld [vmem:[%s6883_s5 + $0x198] sm:$0xff] }
  0xfb   : > { %1328 = vmatprep.subr.bf16.mxu1 %v4349_v15  ;;  %v4393_v12 = vcombine.high %v940_v6, %v944_v7  ;;  %v932_v15 = vld [vmem:[%s6883_s5 + $0x158] sm:$0xff] }
  0xfc   : > { %4825 = vmatprep.mubr.msk.bf16.mxu1 %vm739_vm2, %v705_v23  ;;  %1276 = vmatpush1.bf16.msra.mxu0 %v4386_v37  ;;  %v4340_v23 = vcombine.low %v890_v19, %v894_v21  ;;  %v936_v17 = vld [vmem:[%s6883_s5 + $0x178] sm:$0xff] }
  0xfd   : > { %4826 = vmatmul.mubr.msk.bf16.gmra.mxu1 %vm739_vm2, %v706_v24  ;;  %1277 = vmatprep.subr.bf16.mxu0 %v4379_v43  ;;  %v4341_v24 = vcombine.high %v890_v19, %v894_v21  ;;  %v4392_v19 = vcombine.low %v940_v6, %v944_v7  ;;  %v4385_v21 = vcombine.high %v932_v15, %v936_v17  ;;  %v4879_v6 = vld [vmem:[%s6885_s7 + $0x2c0] ss:$16 sps:$4 sm:$0xff]   ;;  %v4884_v7 = vld [vmem:[%s6885_s7 + $0xa4] ss:$16 sps:$4 sm:$0xff]  }
  0xfe   : > { %1329 = vmatpush1.bf16.msra.mxu1 %v4348_v14  ;;  %1348 = vmatprep.mubr.bf16.mxu1 %v5390_v32  ;;  %v935_v14 = vld [vmem:[%s6883_s5 + $0x170] sm:$0xff]  ;;  %v4384_v26 = vcombine.low %v932_v15, %v936_v17 }
  0xff   : > { %1330 = vmatprep.subr.bf16.mxu1 %v4341_v24  ;;  %v924_v24 = vld [vmem:[%s6883_s5 + $0x118] sm:$0xff]  ;;  %v4896_v15 = vld [vmem:[%s6885_s7 + $0x64] ss:$16 sps:$4 sm:$0xff]  }
 0x100   : > { %1278 = vmatpush1.bf16.msra.mxu0 %v4378_v45  ;;  %v4377_v28 = vcombine.high %v924_v24, %v928_v16  ;;  %v4899_v17 = vld [vmem:[%s6885_s7 + $0x264] ss:$16 sps:$4 sm:$0xff]  }
 0x101   : > { %1279 = vmatprep.subr.bf16.mxu0 %v4371_v51 }
 0x102   : > { %1331 = vmatpush1.bf16.msra.mxu1 %v4340_v23  ;;  %v927_v23 = vld [vmem:[%s6883_s5 + $0x130] sm:$0xff] }
 0x103   : > { %1402 = vmatprep.subr.bf16.mxu1 %v4401_v31  ;;  %v916_v31 = vld [vmem:[%s6883_s5 + $0xd8] sm:$0xff] }
 0x104   : > { %1280 = vmatpush1.bf16.msra.mxu0 %v4370_v53 }
 0x105   : > { %1281 = vmatprep.subr.bf16.mxu0 %v4363_v59 }
 0x108   : > { %1282 = vmatpush1.bf16.msra.mxu0 %v4362_v61 }
 0x109   : > { %1283 = vmatprep.subr.bf16.mxu0 %v4355_v3 }
 0x10c   : > { %1284 = vmatpush1.bf16.msra.mxu0 %v4354_v5  ;;  %v943_v5 = vld [vmem:[%s6883_s5 + $0x1b0] sm:$0xff] }
 0x10d   : > { %1285 = vmatprep.subr.bf16.mxu0 %v4347_v11  ;;  %v4391_v11 = vcombine.high %v939_v4, %v943_v5  ;;  %v4390_v18 = vcombine.low %v939_v4, %v943_v5  ;;  %v4881_v4 = vld [vmem:[%s6885_s7 + $0x2c4] ss:$16 sps:$4 sm:$0xff]   ;;  %v4876_v5 = vld [vmem:[%s6885_s7 + $0xc0] ss:$16 sps:$4 sm:$0xff]  }
 0x110   : > { %1286 = vmatpush1.bf16.msra.mxu0 %v4346_v13  ;;  %v931_v13 = vld [vmem:[%s6883_s5 + $0x150] sm:$0xff] }
 0x111   : > { %1287 = vmatprep.subr.bf16.mxu0 %v4339_v20  ;;  %v4383_v20 = vcombine.high %v931_v13, %v935_v14  ;;  %v4382_v25 = vcombine.low %v931_v13, %v935_v14  ;;  %v4888_v13 = vld [vmem:[%s6885_s7 + $0x80] ss:$16 sps:$4 sm:$0xff]  }
 0x112   : > { %v4891_v14 = vld [vmem:[%s6885_s7 + $0x280] ss:$16 sps:$4 sm:$0xff]  }
 0x114   : > { %1288 = vmatpush1.bf16.msra.mxu0 %v4338_v22  ;;  %v923_v22 = vld [vmem:[%s6883_s5 + $0x110] sm:$0xff] }
 0x115   : > { %1359 = vmatprep.subr.bf16.mxu0 %v4399_v27  ;;  %v4375_v27 = vcombine.high %v923_v22, %v927_v23 }
 0x1a5   : > { %v4815_v33 = vpop.f32.mrf.mxu1 }
 0x1a7   : > { %v798_v34 = vpop.f32.mrf.mxu1 }
 0x1a9   : > { %v4816_v35 = vpop.f32.mrf.mxu1 }
 0x1ab   : > { %v801_v36 = vpop.f32.mrf.mxu1 }
 0x1ad   : > { %v4819_v37 = vpop.f32.mrf.mxu1 }
 0x1ae   : > { %v862_v45 = vmax.f32 %v4815_v33, %v4819_v37  ;;  %v4374_v33 = vcombine.low %v923_v22, %v927_v23  ;;  %v907_v37 = vld [vmem:[%s6883_s5 + $0x90] sm:$0xff] }
 0x1af   : > { %v814_v38 = vpop.f32.mrf.mxu1  ;;  %v4903_v22 = vld [vmem:[%s6885_s7 + $0x240] ss:$16 sps:$4 sm:$0xff]   ;;  %v4905_v23 = vld [vmem:[%s6885_s7 + $0x244] ss:$16 sps:$4 sm:$0xff]  }
 0x1b0   : > { %v861_v46 = vmax.f32 %v798_v34, %v814_v38  ;;  %v4376_v34 = vcombine.low %v924_v24, %v928_v16  ;;  %v911_v38 = vld [vmem:[%s6883_s5 + $0xb0] sm:$0xff] }
 0x1b1   : > { %v4820_v39 = vpop.f32.mrf.mxu1  ;;  %v4908_v24 = vld [vmem:[%s6885_s7 + $0x24] ss:$16 sps:$4 sm:$0xff]  }
 0x1b2   : > { %v869_v51 = vmax.f32 %v4816_v35, %v4820_v39  ;;  %v908_v39 = vld [vmem:[%s6883_s5 + $0x98] sm:$0xff]  ;;  %v4911_v16 = vld [vmem:[%s6885_s7 + $0x224] ss:$16 sps:$4 sm:$0xff]  }
 0x1b3   : > { %v817_v40 = vpop.f32.mrf.mxu1 }
 0x1b4   : > { %v868_v52 = vmax.f32 %v801_v36, %v817_v40  ;;  %v912_v40 = vld [vmem:[%s6883_s5 + $0xb8] sm:$0xff] }
 0x1b5   : > { %v4823_v41 = vpop.f32.mrf.mxu1 }
 0x1b6   : > { %v864_v48 = vmax.f32 %v862_v45, %v4823_v41  ;;  %v899_v45 = vld [vmem:[%s6883_s5 + $0x50] sm:$0xff] }
 0x1b7   : > { %v830_v42 = vpop.f32.mrf.mxu1 }
 0x1b8   : > { %v863_v49 = vmax.f32 %v861_v46, %v830_v42  ;;  %v903_v46 = vld [vmem:[%s6883_s5 + $0x70] sm:$0xff] }
 0x1b9   : > { %v4824_v43 = vpop.f32.mrf.mxu1 }
 0x1ba   : > { %v871_v57 = vmax.f32 %v869_v51, %v4824_v43  ;;  %v4359_v43 = vcombine.high %v907_v37, %v911_v38  ;;  %v4351_v51 = vcombine.high %v899_v45, %v903_v46 }
 0x1bb   : > { %v833_v44 = vpop.f32.mrf.mxu1 }
 0x1bc   : > { %v870_v58 = vmax.f32 %v868_v52, %v833_v44  ;;  %v4361_v44 = vcombine.high %v908_v39, %v912_v40 }
 0x1bd   : > { %v4827_v47 = vpop.f32.mrf.mxu1 }
 0x1be   : > { %v866_v53 = vmax.f32 %v864_v48, %v4827_v47  ;;  %v900_v47 = vld [vmem:[%s6883_s5 + $0x58] sm:$0xff] }
 0x1bf   : > { %v846_v50 = vpop.f32.mrf.mxu1  ;;  %v904_v48 = vld [vmem:[%s6883_s5 + $0x78] sm:$0xff] }
 0x1c0   : > { %v865_v54 = vmax.f32 %v863_v49, %v846_v50  ;;  %v4358_v49 = vcombine.low %v907_v37, %v911_v38  ;;  %v4360_v50 = vcombine.low %v908_v39, %v912_v40  ;;  %v4353_v52 = vcombine.high %v900_v47, %v904_v48  ;;  %v4924_v37 = vld [vmem:[%s6885_s7 + $0x1c0] ss:$16 sps:$4 sm:$0xff]   ;;  %v4932_v39 = vld [vmem:[%s6885_s7 + $0x1a4] ss:$16 sps:$4 sm:$0xff]  }
 0x1c1   : > { %v4828_v56 = vpop.f32.mrf.mxu1  ;;  %v4927_v38 = vld [vmem:[%s6885_s7 + $0x3c0] ss:$16 sps:$4 sm:$0xff]   ;;  %v4935_v40 = vld [vmem:[%s6885_s7 + $0x3a4] ss:$16 sps:$4 sm:$0xff]  }
 0x1c2   : > { %v867_v59 = vmax.f32 %v865_v54, %v866_v53  ;;  %v873_v62 = vmax.f32 %v871_v57, %v4828_v56  ;;  %v891_v53 = vld [vmem:[%s6883_s5 + $0x10] sm:$0xff]  ;;  %v896_v56 = vld [vmem:[%s6883_s5 + $0x38] sm:$0xff]  ;;  %v4350_v57 = vcombine.low %v899_v45, %v903_v46 }
 0x1c3   : > { %v849_v60 = vpop.f32.mrf.mxu1  ;;  %v895_v54 = vld [vmem:[%s6883_s5 + $0x30] sm:$0xff] }
 0x1c4   : > { %v882_v61 = vadd.f32 %v4337_v55, %v867_v59  ;;  %v872_v63 = vmax.f32 %v870_v58, %v849_v60  ;;  %v4352_v58 = vcombine.low %v900_v47, %v904_v48  ;;  %v4343_v59 = vcombine.high %v891_v53, %v895_v54  ;;  %v4936_v45 = vld [vmem:[%s6885_s7 + $0x180] ss:$16 sps:$4 sm:$0xff]   ;;  %v4944_v47 = vld [vmem:[%s6885_s7 + $0x164] ss:$16 sps:$4 sm:$0xff]  }
 0x1c5   : > { %v4939_v46 = vld [vmem:[%s6885_s7 + $0x380] ss:$16 sps:$4 sm:$0xff]   ;;  %v4947_v48 = vld [vmem:[%s6885_s7 + $0x364] ss:$16 sps:$4 sm:$0xff]  }
 0x1c6   : > { %v874_v0 = vmax.f32 %v872_v63, %v873_v62  ;;  %v884_v1 = vmul.f32 0.2, %v882_v61  ;;  %v4872_v63 = vld [vmem:[%s6885_s7 + $0xe4] ss:$16 sps:$4 sm:$0xff]  }
 0x1c8   : > { %v883_v2 = vadd.f32 %v4337_v55, %v874_v0  ;;  %v886_v8 = vmax.f32 %v882_v61, %v884_v1  ;;  %v892_v55 = vld [vmem:[%s6883_s5 + $0x18] sm:$0xff]  ;;  %v4342_v61 = vcombine.low %v891_v53, %v895_v54  ;;  %v4875_v0 = vld [vmem:[%s6885_s7 + $0x2e4] ss:$16 sps:$4 sm:$0xff]   ;;  %v4870_v1 = vld [vmem:[%s6885_s7 + $0xe0] ss:$16 sps:$4 sm:$0xff]  }
 0x1c9   : > { %v4345_v60 = vcombine.high %v892_v55, %v896_v56  ;;  %v4344_v62 = vcombine.low %v892_v55, %v896_v56  ;;  %v4948_v53 = vld [vmem:[%s6885_s7 + $0x140] ss:$16 sps:$4 sm:$0xff]   ;;  %v4956_v55 = vld [vmem:[%s6885_s7 + $0x124] ss:$16 sps:$4 sm:$0xff]  }
 0x1ca   : > { %v885_v3 = vmul.f32 0.2, %v883_v2  ;;  %v4951_v54 = vld [vmem:[%s6885_s7 + $0x340] ss:$16 sps:$4 sm:$0xff]   ;;  %v4959_v56 = vld [vmem:[%s6885_s7 + $0x324] ss:$16 sps:$4 sm:$0xff]  }
 0x1cc   : > { %v887_v9 = vmax.f32 %v883_v2, %v885_v3  ;;  %v4873_v2 = vld [vmem:[%s6885_s7 + $0x2e0] ss:$16 sps:$4 sm:$0xff]   ;;  %v4878_v3 = vld [vmem:[%s6885_s7 + $0xc4] ss:$16 sps:$4 sm:$0xff]  }
 0x1ce   : > { %v5678_v10 = vpack.c.bf16 %v887_v9, %v886_v8  ;;  %v4887_v8 = vld [vmem:[%s6885_s7 + $0x2a4] ss:$16 sps:$4 sm:$0xff]   ;;  %v4882_v9 = vld [vmem:[%s6885_s7 + $0xa0] ss:$16 sps:$4 sm:$0xff]  }
 0x1d0   : > { %1306 = vmatmul.mubr.bf16.vlgmr.msra.gmra.mxu0 %v5678_v10  ;;  %1349 = vmatmul.mubr.bf16.vlgmr.msra.gmra.mxu1 %v5678_v10 }
 0x1d1   : > { %1360 = vmatpush1.bf16.msra.mxu0 %v4398_v29  ;;  %1403 = vmatpush1.bf16.msra.mxu1 %v4400_v30  ;;  %v915_v29 = vld [vmem:[%s6883_s5 + $0xd0] sm:$0xff] }
 0x1d2   : > { %1361 = vmatprep.subr.bf16.mxu0 %v4391_v11  ;;  %1404 = vmatprep.subr.bf16.mxu1 %v4393_v12  ;;  %v919_v30 = vld [vmem:[%s6883_s5 + $0xf0] sm:$0xff] }
 0x1d3   : > { %1391 = vmatprep.mubr.bf16.mxu0 %v5390_v32  ;;  %1434 = vmatprep.mubr.bf16.mxu1 %v5390_v32  ;;  %v920_v32 = vld [vmem:[%s6883_s5 + $0xf8] sm:$0xff]  ;;  %v4367_v35 = vcombine.high %v915_v29, %v919_v30  ;;  %v4366_v41 = vcombine.low %v915_v29, %v919_v30  ;;  %v4890_v11 = vld [vmem:[%s6885_s7 + $0x84] ss:$16 sps:$4 sm:$0xff]   ;;  %v4912_v29 = vld [vmem:[%s6885_s7] ss:$16 sps:$4 sm:$0xff]  }
 0x1d4   : > { %v4369_v36 = vcombine.high %v916_v31, %v920_v32  ;;  %v4368_v42 = vcombine.low %v916_v31, %v920_v32  ;;  %v4893_v12 = vld [vmem:[%s6885_s7 + $0x284] ss:$16 sps:$4 sm:$0xff]   ;;  %v4915_v30 = vld [vmem:[%s6885_s7 + $0x200] ss:$16 sps:$4 sm:$0xff]  }
 0x1d5   : > { %1362 = vmatpush1.bf16.msra.mxu0 %v4390_v18  ;;  %1405 = vmatpush1.bf16.msra.mxu1 %v4392_v19  ;;  %v4894_v18 = vld [vmem:[%s6885_s7 + $0x60] ss:$16 sps:$4 sm:$0xff]   ;;  %v4920_v31 = vld [vmem:[%s6885_s7 + $0x1e4] ss:$16 sps:$4 sm:$0xff]  }
 0x1d6   : > { %1363 = vmatprep.subr.bf16.mxu0 %v4383_v20  ;;  %1406 = vmatprep.subr.bf16.mxu1 %v4385_v21  ;;  %v4897_v19 = vld [vmem:[%s6885_s7 + $0x260] ss:$16 sps:$4 sm:$0xff]   ;;  %v4902_v21 = vld [vmem:[%s6885_s7 + $0x44] ss:$16 sps:$4 sm:$0xff]  }
 0x1d7   : > { %v4900_v20 = vld [vmem:[%s6885_s7 + $0x40] ss:$16 sps:$4 sm:$0xff]   ;;  %v4923_v32 = vld [vmem:[%s6885_s7 + $0x3e4] ss:$16 sps:$4 sm:$0xff]  }
 0x1d9   : > { %1364 = vmatpush1.bf16.msra.mxu0 %v4382_v25  ;;  %1407 = vmatpush1.bf16.msra.mxu1 %v4384_v26  ;;  %v4906_v25 = vld [vmem:[%s6885_s7 + $0x20] ss:$16 sps:$4 sm:$0xff]  }
 0x1da   : > { %1365 = vmatprep.subr.bf16.mxu0 %v4375_v27  ;;  %1408 = vmatprep.subr.bf16.mxu1 %v4377_v28  ;;  %v4909_v26 = vld [vmem:[%s6885_s7 + $0x220] ss:$16 sps:$4 sm:$0xff]   ;;  %v4914_v27 = vld [vmem:[%s6885_s7 + $0x4] ss:$16 sps:$4 sm:$0xff]  }
 0x1db   : > { %v4917_v28 = vld [vmem:[%s6885_s7 + $0x204] ss:$16 sps:$4 sm:$0xff]  }
 0x1dd   : > { %1366 = vmatpush1.bf16.msra.mxu0 %v4374_v33  ;;  %1409 = vmatpush1.bf16.msra.mxu1 %v4376_v34  ;;  %v4918_v33 = vld [vmem:[%s6885_s7 + $0x1e0] ss:$16 sps:$4 sm:$0xff]  }
 0x1de   : > { %1367 = vmatprep.subr.bf16.mxu0 %v4367_v35  ;;  %1410 = vmatprep.subr.bf16.mxu1 %v4369_v36  ;;  %v4921_v34 = vld [vmem:[%s6885_s7 + $0x3e0] ss:$16 sps:$4 sm:$0xff]   ;;  %v4926_v35 = vld [vmem:[%s6885_s7 + $0x1c4] ss:$16 sps:$4 sm:$0xff]  }
 0x1df   : > { %v4929_v36 = vld [vmem:[%s6885_s7 + $0x3c4] ss:$16 sps:$4 sm:$0xff]  }
 0x1e1   : > { %1368 = vmatpush1.bf16.msra.mxu0 %v4366_v41  ;;  %1411 = vmatpush1.bf16.msra.mxu1 %v4368_v42  ;;  %v4930_v41 = vld [vmem:[%s6885_s7 + $0x1a0] ss:$16 sps:$4 sm:$0xff]  }
 0x1e2   : > { %1369 = vmatprep.subr.bf16.mxu0 %v4359_v43  ;;  %1412 = vmatprep.subr.bf16.mxu1 %v4361_v44  ;;  %v4933_v42 = vld [vmem:[%s6885_s7 + $0x3a0] ss:$16 sps:$4 sm:$0xff]   ;;  %v4938_v43 = vld [vmem:[%s6885_s7 + $0x184] ss:$16 sps:$4 sm:$0xff]  }
 0x1e3   : > { %v4941_v44 = vld [vmem:[%s6885_s7 + $0x384] ss:$16 sps:$4 sm:$0xff]  }
 0x1e5   : > { %1370 = vmatpush1.bf16.msra.mxu0 %v4358_v49  ;;  %1413 = vmatpush1.bf16.msra.mxu1 %v4360_v50  ;;  %v4942_v49 = vld [vmem:[%s6885_s7 + $0x160] ss:$16 sps:$4 sm:$0xff]  }
 0x1e6   : > { %1371 = vmatprep.subr.bf16.mxu0 %v4351_v51  ;;  %1414 = vmatprep.subr.bf16.mxu1 %v4353_v52  ;;  %v4945_v50 = vld [vmem:[%s6885_s7 + $0x360] ss:$16 sps:$4 sm:$0xff]   ;;  %v4950_v51 = vld [vmem:[%s6885_s7 + $0x144] ss:$16 sps:$4 sm:$0xff]  }
 0x1e7   : > { %v4953_v52 = vld [vmem:[%s6885_s7 + $0x344] ss:$16 sps:$4 sm:$0xff]  }
 0x1e9   : > { %1372 = vmatpush1.bf16.msra.mxu0 %v4350_v57  ;;  %1415 = vmatpush1.bf16.msra.mxu1 %v4352_v58  ;;  %v4954_v57 = vld [vmem:[%s6885_s7 + $0x120] ss:$16 sps:$4 sm:$0xff]  }
 0x1ea   : > { %1373 = vmatprep.subr.bf16.mxu0 %v4343_v59  ;;  %1416 = vmatprep.subr.bf16.mxu1 %v4345_v60  ;;  %v4957_v58 = vld [vmem:[%s6885_s7 + $0x320] ss:$16 sps:$4 sm:$0xff]   ;;  %v4962_v60 = vld [vmem:[%s6885_s7 + $0x104] ss:$16 sps:$4 sm:$0xff]  }
 0x1eb   : > { %v4960_v59 = vld [vmem:[%s6885_s7 + $0x100] ss:$16 sps:$4 sm:$0xff]  }
 0x1ed   : > { %1374 = vmatpush1.bf16.msra.mxu0 %v4342_v61  ;;  %1417 = vmatpush1.bf16.msra.mxu1 %v4344_v62  ;;  %v4963_v61 = vld [vmem:[%s6885_s7 + $0x300] ss:$16 sps:$4 sm:$0xff]   ;;  %v4965_v62 = vld [vmem:[%s6885_s7 + $0x304] ss:$16 sps:$4 sm:$0xff]  }
 0x1ee   : > { %3244 = vmatprep.subr.bf16.mxu0 %v4872_v63  ;;  %3285 = vmatprep.subr.bf16.mxu1 %v4875_v0  ;;  %v4968_v63 = vld [vmem:[%s6885_s7 + $0x4e4] ss:$16 sps:$4 sm:$0xff]  }
 0x1ef   : > { %v4971_v0 = vld [vmem:[%s6885_s7 + $0x6e4] ss:$16 sps:$4 sm:$0xff]  }
 0x1f0   : > { %1392 = vmatmul.mubr.bf16.vlgmr.msra.gmra.mxu0 %v5678_v10  ;;  %1435 = vmatmul.mubr.bf16.vlgmr.msra.gmra.mxu1 %v5678_v10  ;;  %v4885_v10 = vld [vmem:[%s6885_s7 + $0x2a0] ss:$16 sps:$4 sm:$0xff]  }
 0x1f1   : > { %3245 = vmatpush1.bf16.msra.mxu0 %v4870_v1  ;;  %3286 = vmatpush1.bf16.msra.mxu1 %v4873_v2 }
 0x1f2   : > { %3246 = vmatprep.subr.bf16.mxu0 %v4878_v3  ;;  %3287 = vmatprep.subr.bf16.mxu1 %v4881_v4 }
 0x1f5   : > { %3247 = vmatpush1.bf16.msra.mxu0 %v4876_v5  ;;  %3288 = vmatpush1.bf16.msra.mxu1 %v4879_v6 }
 0x1f6   : > { %3248 = vmatprep.subr.bf16.mxu0 %v4884_v7  ;;  %3289 = vmatprep.subr.bf16.mxu1 %v4887_v8 }
 0x1f9   : > { %3249 = vmatpush1.bf16.msra.mxu0 %v4882_v9  ;;  %3290 = vmatpush1.bf16.msra.mxu1 %v4885_v10 }
 0x1fa   : > { %3250 = vmatprep.subr.bf16.mxu0 %v4890_v11  ;;  %3291 = vmatprep.subr.bf16.mxu1 %v4893_v12 }
 0x1fd   : > { %3251 = vmatpush1.bf16.msra.mxu0 %v4888_v13  ;;  %3292 = vmatpush1.bf16.msra.mxu1 %v4891_v14 }
 0x1fe   : > { %3252 = vmatprep.subr.bf16.mxu0 %v4896_v15  ;;  %3293 = vmatprep.subr.bf16.mxu1 %v4899_v17 }
 0x201   : > { %3253 = vmatpush1.bf16.msra.mxu0 %v4894_v18  ;;  %3294 = vmatpush1.bf16.msra.mxu1 %v4897_v19 }
 0x202   : > { %3254 = vmatprep.subr.bf16.mxu0 %v4902_v21  ;;  %3295 = vmatprep.subr.bf16.mxu1 %v4905_v23 }
 0x205   : > { %3255 = vmatpush1.bf16.msra.mxu0 %v4900_v20  ;;  %3296 = vmatpush1.bf16.msra.mxu1 %v4903_v22 }
 0x206   : > { %3256 = vmatprep.subr.bf16.mxu0 %v4908_v24  ;;  %3297 = vmatprep.subr.bf16.mxu1 %v4911_v16 }
 0x209   : > { %3257 = vmatpush1.bf16.msra.mxu0 %v4906_v25  ;;  %3298 = vmatpush1.bf16.msra.mxu1 %v4909_v26 }
 0x20a   : > { %3258 = vmatprep.subr.bf16.mxu0 %v4914_v27  ;;  %3299 = vmatprep.subr.bf16.mxu1 %v4917_v28 }
 0x20d   : > { %3259 = vmatpush1.bf16.msra.mxu0 %v4912_v29  ;;  %3300 = vmatpush1.bf16.msra.mxu1 %v4915_v30 }
 0x20e   : > { %3260 = vmatprep.subr.bf16.mxu0 %v4920_v31  ;;  %3301 = vmatprep.subr.bf16.mxu1 %v4923_v32 }
 0x211   : > { %3261 = vmatpush2.bf16.msra.mxu0 %v4918_v33  ;;  %3302 = vmatpush2.bf16.msra.mxu1 %v4921_v34 }
 0x212   : > { %3262 = vmatprep.subr.bf16.mxu0 %v4926_v35  ;;  %3303 = vmatprep.subr.bf16.mxu1 %v4929_v36 }
 0x215   : > { %3263 = vmatpush2.bf16.msra.mxu0 %v4924_v37  ;;  %3304 = vmatpush2.bf16.msra.mxu1 %v4927_v38  ;;  %v5391_v38 = vmov 1966171168  }
 0x216   : > { %3264 = vmatprep.subr.bf16.mxu0 %v4932_v39  ;;  %3305 = vmatprep.subr.bf16.mxu1 %v4935_v40  ;;  %v1518_v39 = vunpack.c.l.s4 %v5391_v38  ;;  %v1520_v40 = vlaneseq }
 0x219   : > { %3265 = vmatpush2.bf16.msra.mxu0 %v4930_v41  ;;  %3306 = vmatpush2.bf16.msra.mxu1 %v4933_v42 }
 0x21a   : > { %3266 = vmatprep.subr.bf16.mxu0 %v4938_v43  ;;  %3307 = vmatprep.subr.bf16.mxu1 %v4941_v44 }
 0x21d   : > { %3267 = vmatpush2.bf16.msra.mxu0 %v4936_v45  ;;  %3308 = vmatpush2.bf16.msra.mxu1 %v4939_v46 }
 0x21e   : > { %3268 = vmatprep.subr.bf16.mxu0 %v4944_v47  ;;  %3309 = vmatprep.subr.bf16.mxu1 %v4947_v48 }
 0x221   : > { %3269 = vmatpush2.bf16.msra.mxu0 %v4942_v49  ;;  %3310 = vmatpush2.bf16.msra.mxu1 %v4945_v50 }
 0x222   : > { %3270 = vmatprep.subr.bf16.mxu0 %v4950_v51  ;;  %3311 = vmatprep.subr.bf16.mxu1 %v4953_v52 }
 0x225   : > { %3271 = vmatpush2.bf16.msra.mxu0 %v4948_v53  ;;  %3312 = vmatpush2.bf16.msra.mxu1 %v4951_v54 }
 0x226   : > { %3272 = vmatprep.subr.bf16.mxu0 %v4956_v55  ;;  %3313 = vmatprep.subr.bf16.mxu1 %v4959_v56  ;;  %v1519_v55 = vunpack.c.0.s8 %v1518_v39  ;;  %v5956_v56 = vshrl.u32 %v1520_v40, 7 }
 0x228   : > { %v1664_v38 = vsub.s32 6, %v5956_v56 }
 0x229   : > { %3273 = vmatpush2.bf16.msra.mxu0 %v4954_v57  ;;  %3314 = vmatpush2.bf16.msra.mxu1 %v4957_v58 }
 0x22a   : > { %3274 = vmatprep.subr.bf16.mxu0 %v4962_v60  ;;  %3315 = vmatprep.subr.bf16.mxu1 %v4965_v62 }
 0x22d   : > { %3275 = vmatpush2.bf16.msra.mxu0 %v4960_v59  ;;  %3316 = vmatpush2.bf16.msra.mxu1 %v4963_v61 }
 0x22e   : > { %3326 = vmatprep.subr.bf16.mxu0 %v4968_v63  ;;  %3367 = vmatprep.subr.bf16.mxu1 %v4971_v0 }
 0x290   : > { %v1307_v1 = vpop.f32.mrf.mxu0  ;;  %v1350_v2 = vpop.f32.mrf.mxu1 }
 0x292   : > { %v1309_v3 = vpop.f32.mrf.mxu0  ;;  %v1352_v4 = vpop.f32.mrf.mxu1 }
 0x294   : > { %v1311_v5 = vpop.f32.mrf.mxu0  ;;  %v1354_v6 = vpop.f32.mrf.mxu1 }
 0x295   : > { %v1445_v11 = vmax.f32 %v1307_v1, %v1311_v5  ;;  %v1459_v12 = vmax.f32 %v1350_v2, %v1354_v6  ;;  %v1522_v5 = vsub.s32 %v1519_v55, %v5956_v56  ;;  %v4977_v55 = vld [vmem:[%s6885_s7 + $0x6c4] ss:$16 sps:$4 sm:$0xff]  }
 0x296   : > { %v1313_v7 = vpop.f32.mrf.mxu0  ;;  %v1356_v8 = vpop.f32.mrf.mxu1 }
 0x297   : > { %v1452_v9 = vmax.f32 %v1309_v3, %v1313_v7  ;;  %v1466_v10 = vmax.f32 %v1352_v4, %v1356_v8  ;;  %v1446_v15 = vrot.slane %v1445_v11, 4  ;;  %v1460_v17 = vrot.slane %v1459_v12, 4 }
 0x299   : > { %v1453_v13 = vrot.slane %v1452_v9, 4  ;;  %v1467_v14 = vrot.slane %v1466_v10, 4  ;;  %v1447_v20 = vmax.f32 %v1445_v11, %v1446_v15  ;;  %v1461_v21 = vmax.f32 %v1459_v12, %v1460_v17 }
 0x29b   : > { %v1454_v18 = vmax.f32 %v1452_v9, %v1453_v13  ;;  %v1468_v19 = vmax.f32 %v1466_v10, %v1467_v14  ;;  %v1448_v24 = vrot.slane %v1447_v20, 2  ;;  %v1462_v16 = vrot.slane %v1461_v21, 2 }
 0x29d   : > { %v1455_v22 = vrot.slane %v1454_v18, 2  ;;  %v1469_v23 = vrot.slane %v1468_v19, 2  ;;  %v1449_v31 = vmax.f32 %v1447_v20, %v1448_v24  ;;  %v1463_v32 = vmax.f32 %v1461_v21, %v1462_v16 }
 0x29f   : > { %v1456_v27 = vmax.f32 %v1454_v18, %v1455_v22  ;;  %v1470_v28 = vmax.f32 %v1468_v19, %v1469_v23  ;;  %v1450_v48 = vrot.slane %v1449_v31, 1  ;;  %v1464_v49 = vrot.slane %v1463_v32, 1 }
 0x2a1   : > { %v1457_v37 = vrot.slane %v1456_v27, 1  ;;  %v1471_v41 = vrot.slane %v1470_v28, 1  ;;  %v1451_v62 = vmax.f32 %v1449_v31, %v1450_v48  ;;  %v1465_v63 = vmax.f32 %v1463_v32, %v1464_v49 }
 0x2a2   : > { %v1652_v32 = vsub.s32 3, %v5956_v56 }
 0x2a3   : > { %v1458_v54 = vmax.f32 %v1456_v27, %v1457_v37  ;;  %v1472_v57 = vmax.f32 %v1470_v28, %v1471_v41  ;;  %v1633_v27 = vld [vmem:[%s6884_s6] sm:$0xff]  ;;  %v1656_v37 = vsub.s32 4, %v5956_v56 }
 0x2a5   : > { %v1513_v4 = vcombine.low %v1451_v62, %v1458_v54  ;;  %v1514_v6 = vcombine.low %v1465_v63, %v1472_v57  ;;  %v4974_v54 = vld [vmem:[%s6885_s7 + $0x4c4] ss:$16 sps:$4 sm:$0xff]   ;;  %v4978_v63 = vld [vmem:[%s6885_s7 + $0x4a0] ss:$16 sps:$4 sm:$0xff]  }
 0x2a6   : > { %v4983_v62 = vld [vmem:[%s6885_s7 + $0x6a4] ss:$16 sps:$4 sm:$0xff]  }
 0x2a7   : > { %v1523_v13 = vrot.slane %v1513_v4, %v1522_v5  ;;  %v1530_v14 = vrot.slane %v1514_v6, %v1522_v5  ;;  %v4987_v4 = vld [vmem:[%s6885_s7 + $0x680] ss:$16 sps:$4 sm:$0xff]   ;;  %v4995_v6 = vld [vmem:[%s6885_s7 + $0x664] ss:$16 sps:$4 sm:$0xff]  }
 0x2a9   : > { %v1545_v22 = vcombine.low %v1523_v13, %v1530_v14  ;;  %v5004_v13 = vld [vmem:[%s6885_s7 + $0x424] ss:$16 sps:$4 sm:$0xff]  }
 0x2aa   : > { %v5007_v14 = vld [vmem:[%s6885_s7 + $0x624] ss:$16 sps:$4 sm:$0xff]  }
 0x2b0   : > { %v1393_v25 = vpop.f32.mrf.mxu0  ;;  %v1436_v26 = vpop.f32.mrf.mxu1 }
 0x2b2   : > { %v1395_v29 = vpop.f32.mrf.mxu0  ;;  %v1438_v30 = vpop.f32.mrf.mxu1 }
 0x2b4   : > { %v1397_v33 = vpop.f32.mrf.mxu0  ;;  %v1440_v34 = vpop.f32.mrf.mxu1 }
 0x2b5   : > { %v1473_v35 = vmax.f32 %v1393_v25, %v1397_v33  ;;  %v1487_v36 = vmax.f32 %v1436_v26, %v1440_v34  ;;  %v1553_v25 = vrot.slane %v1545_v22, %v1522_v5  ;;  %v5967_v33 = vsub.s32 0, %v5956_v56  ;;  %v5016_v22 = vld [vmem:[%s6885_s7 + $0x5e4] ss:$16 sps:$4 sm:$0xff]  }
 0x2b6   : > { %v1399_v42 = vpop.f32.mrf.mxu0  ;;  %v1442_v43 = vpop.f32.mrf.mxu1  ;;  %v1648_v34 = vsub.s32 2, %v5956_v56 }
 0x2b7   : > { %v1474_v44 = vrot.slane %v1473_v35, 4  ;;  %v1488_v45 = vrot.slane %v1487_v36, 4  ;;  %v1480_v46 = vmax.f32 %v1395_v29, %v1399_v42  ;;  %v1494_v47 = vmax.f32 %v1438_v30, %v1442_v43 }
 0x2b8   : > { %v5963_v30 = vsub.s32 1, %v5956_v56 }
 0x2b9   : > { %v1475_v50 = vmax.f32 %v1473_v35, %v1474_v44  ;;  %v1489_v51 = vmax.f32 %v1487_v36, %v1488_v45  ;;  %v1481_v52 = vrot.slane %v1480_v46, 4  ;;  %v1495_v53 = vrot.slane %v1494_v47, 4 }
 0x2ba   : > { %v1660_v35 = vsub.s32 5, %v5956_v56  ;;  %v1668_v36 = vsub.s32 7, %v5956_v56 }
 0x2bb   : > { %v1476_v58 = vrot.slane %v1475_v50, 2  ;;  %v1490_v59 = vrot.slane %v1489_v51, 2  ;;  %v1482_v60 = vmax.f32 %v1480_v46, %v1481_v52  ;;  %v1496_v61 = vmax.f32 %v1494_v47, %v1495_v53 }
 0x2bd   : > { %v1477_v0 = vmax.f32 %v1475_v50, %v1476_v58  ;;  %v1491_v1 = vmax.f32 %v1489_v51, %v1490_v59  ;;  %v1483_v2 = vrot.slane %v1482_v60, 2  ;;  %v1497_v3 = vrot.slane %v1496_v61, 2  ;;  %v4966_v50 = vld [vmem:[%s6885_s7 + $0x4e0] ss:$16 sps:$4 sm:$0xff]  }
 0x2be   : > { %v4969_v51 = vld [vmem:[%s6885_s7 + $0x6e0] ss:$16 sps:$4 sm:$0xff]  }
 0x2bf   : > { %v1478_v7 = vrot.slane %v1477_v0, 1  ;;  %v1492_v8 = vrot.slane %v1491_v1, 1  ;;  %v1484_v9 = vmax.f32 %v1482_v60, %v1483_v2  ;;  %v1498_v10 = vmax.f32 %v1496_v61, %v1497_v3  ;;  %v4972_v59 = vld [vmem:[%s6885_s7 + $0x4c0] ss:$16 sps:$4 sm:$0xff]   ;;  %v4980_v61 = vld [vmem:[%s6885_s7 + $0x4a4] ss:$16 sps:$4 sm:$0xff]  }
 0x2c0   : > { %v4975_v60 = vld [vmem:[%s6885_s7 + $0x6c0] ss:$16 sps:$4 sm:$0xff]   ;;  %v4989_v2 = vld [vmem:[%s6885_s7 + $0x684] ss:$16 sps:$4 sm:$0xff]  }
 0x2c1   : > { %v1485_v11 = vrot.slane %v1484_v9, 1  ;;  %v1499_v12 = vrot.slane %v1498_v10, 1  ;;  %v1479_v15 = vmax.f32 %v1477_v0, %v1478_v7  ;;  %v1493_v17 = vmax.f32 %v1491_v1, %v1492_v8  ;;  %v4981_v0 = vld [vmem:[%s6885_s7 + $0x6a0] ss:$16 sps:$4 sm:$0xff]   ;;  %v4986_v1 = vld [vmem:[%s6885_s7 + $0x484] ss:$16 sps:$4 sm:$0xff]  }
 0x2c2   : > { %v4984_v3 = vld [vmem:[%s6885_s7 + $0x480] ss:$16 sps:$4 sm:$0xff]  }
 0x2c3   : > { %v1486_v18 = vmax.f32 %v1484_v9, %v1485_v11  ;;  %v1500_v19 = vmax.f32 %v1498_v10, %v1499_v12  ;;  %v4990_v7 = vld [vmem:[%s6885_s7 + $0x460] ss:$16 sps:$4 sm:$0xff]   ;;  %v4998_v9 = vld [vmem:[%s6885_s7 + $0x444] ss:$16 sps:$4 sm:$0xff]  }
 0x2c4   : > { %v4993_v8 = vld [vmem:[%s6885_s7 + $0x660] ss:$16 sps:$4 sm:$0xff]   ;;  %v5001_v10 = vld [vmem:[%s6885_s7 + $0x644] ss:$16 sps:$4 sm:$0xff]  }
 0x2c5   : > { %v1515_v20 = vcombine.low %v1479_v15, %v1486_v18  ;;  %v1516_v21 = vcombine.low %v1493_v17, %v1500_v19  ;;  %v4996_v11 = vld [vmem:[%s6885_s7 + $0x440] ss:$16 sps:$4 sm:$0xff]   ;;  %v5010_v18 = vld [vmem:[%s6885_s7 + $0x404] ss:$16 sps:$4 sm:$0xff]  }
 0x2c6   : > { %v4999_v12 = vld [vmem:[%s6885_s7 + $0x640] ss:$16 sps:$4 sm:$0xff]   ;;  %v5013_v19 = vld [vmem:[%s6885_s7 + $0x604] ss:$16 sps:$4 sm:$0xff]  }
 0x2c7   : > { %v1537_v23 = vrot.slane %v1515_v20, %v1522_v5  ;;  %v1544_v24 = vrot.slane %v1516_v21, %v1522_v5  ;;  %v5002_v15 = vld [vmem:[%s6885_s7 + $0x420] ss:$16 sps:$4 sm:$0xff]  }
 0x2c8   : > { %v5005_v17 = vld [vmem:[%s6885_s7 + $0x620] ss:$16 sps:$4 sm:$0xff]  }
 0x2c9   : > { %v1546_v16 = vcombine.low %v1537_v23, %v1544_v24  ;;  %v5008_v20 = vld [vmem:[%s6885_s7 + $0x400] ss:$16 sps:$4 sm:$0xff]   ;;  %v5019_v23 = vld [vmem:[%s6885_s7 + $0x7e4] ss:$16 sps:$4 sm:$0xff]  }
 0x2ca   : > { %v5011_v21 = vld [vmem:[%s6885_s7 + $0x600] ss:$16 sps:$4 sm:$0xff]  }
 0x2cb   : > { %v1560_v26 = vrot.slane %v1546_v16, %v1522_v5  ;;  %v4992_v5 = vld [vmem:[%s6885_s7 + $0x464] ss:$16 sps:$4 sm:$0xff]   ;;  %v5014_v24 = vld [vmem:[%s6885_s7 + $0x5e0] ss:$16 sps:$4 sm:$0xff]  }
 0x2cc   : > { %v5017_v16 = vld [vmem:[%s6885_s7 + $0x7e0] ss:$16 sps:$4 sm:$0xff]  }
 0x2cd   : > { %v1561_v28 = vcombine.low %v1553_v25, %v1560_v26  ;;  %v5022_v25 = vld [vmem:[%s6885_s7 + $0x5c4] ss:$16 sps:$4 sm:$0xff]  }
 0x2ce   : > { %v5025_v26 = vld [vmem:[%s6885_s7 + $0x7c4] ss:$16 sps:$4 sm:$0xff]  }
 0x2cf   : > { %v1634_v29 = vadd.f32 %v1633_v27, %v1561_v28  ;;  %v5020_v27 = vld [vmem:[%s6885_s7 + $0x5c0] ss:$16 sps:$4 sm:$0xff]  }
 0x2d0   : > { %v5023_v28 = vld [vmem:[%s6885_s7 + $0x7c0] ss:$16 sps:$4 sm:$0xff]  }
 0x2d1   : > { %v1635_v31 = vmul.f32 0.2, %v1634_v29 }
 0x2d3   : > { %v1636_v39 = vmax.f32 %v1634_v29, %v1635_v31  ;;  %v5028_v29 = vld [vmem:[%s6885_s7 + $0x5a4] ss:$16 sps:$4 sm:$0xff]  }
 0x2d4   : > { %v5031_v31 = vld [vmem:[%s6885_s7 + $0x7a4] ss:$16 sps:$4 sm:$0xff]  }
 0x2d5   : > { %v1645_v40 = vrot.slane %v1636_v39, %v5963_v30  ;;  %v1653_v41 = vrot.slane %v1636_v39, %v1652_v32  ;;  %v1641_v42 = vrot.slane %v1636_v39, %v5967_v33  ;;  %v1649_v43 = vrot.slane %v1636_v39, %v1648_v34 }
 0x2d6   : > { %v1661_v44 = vrot.slane %v1636_v39, %v1660_v35  ;;  %v1669_v45 = vrot.slane %v1636_v39, %v1668_v36  ;;  %v5980_v46 = vrot.slane %v1636_v39, %v1656_v37  ;;  %v5982_v47 = vrot.slane %v1636_v39, %v1664_v38  ;;  %v5026_v35 = vld [vmem:[%s6885_s7 + $0x5a0] ss:$16 sps:$4 sm:$0xff]   ;;  %v5034_v37 = vld [vmem:[%s6885_s7 + $0x584] ss:$16 sps:$4 sm:$0xff]  }
 0x2d7   : > { %v5984_v48 = vpack.c.bf16 %v1645_v40, %v1645_v40  ;;  %v5986_v49 = vpack.c.bf16 %v1653_v41, %v1653_v41  ;;  %v5994_v52 = vpack.c.bf16 %v1641_v42, %v1641_v42  ;;  %v5996_v53 = vpack.c.bf16 %v1649_v43, %v1649_v43  ;;  %v5029_v36 = vld [vmem:[%s6885_s7 + $0x7a0] ss:$16 sps:$4 sm:$0xff]   ;;  %v5037_v38 = vld [vmem:[%s6885_s7 + $0x784] ss:$16 sps:$4 sm:$0xff]  }
 0x2d8   : > { %v6008_v57 = vpack.c.bf16 %v1661_v44, %v1661_v44  ;;  %v6010_v58 = vpack.c.bf16 %v1669_v45, %v1669_v45  ;;  %v5032_v39 = vld [vmem:[%s6885_s7 + $0x580] ss:$16 sps:$4 sm:$0xff]   ;;  %v5040_v41 = vld [vmem:[%s6885_s7 + $0x564] ss:$16 sps:$4 sm:$0xff]  }
 0x2d9   : > { %3276 = vmatprep.mubr.bf16.mxu0 %v5984_v48  ;;  %3317 = vmatprep.mubr.bf16.mxu1 %v5986_v49  ;;  %v5035_v40 = vld [vmem:[%s6885_s7 + $0x780] ss:$16 sps:$4 sm:$0xff]   ;;  %v5043_v42 = vld [vmem:[%s6885_s7 + $0x764] ss:$16 sps:$4 sm:$0xff]  }
 0x2da   : > { %3277 = vmatmul.mubr.bf16.vlgmr.msra.gmra.mxu0 %v5994_v52  ;;  %3318 = vmatmul.mubr.bf16.vlgmr.msra.gmra.mxu1 %v5996_v53  ;;  %v5038_v43 = vld [vmem:[%s6885_s7 + $0x560] ss:$16 sps:$4 sm:$0xff]   ;;  %v5046_v45 = vld [vmem:[%s6885_s7 + $0x544] ss:$16 sps:$4 sm:$0xff]  }
 0x2db   : > { %3327 = vmatpush1.bf16.msra.mxu0 %v4966_v50  ;;  %3368 = vmatpush1.bf16.msra.mxu1 %v4969_v51  ;;  %v5041_v44 = vld [vmem:[%s6885_s7 + $0x760] ss:$16 sps:$4 sm:$0xff]   ;;  %v5049_v50 = vld [vmem:[%s6885_s7 + $0x744] ss:$16 sps:$4 sm:$0xff]  }
 0x2dc   : > { %3358 = vmatprep.mubr.bf16.mxu0 %v6008_v57  ;;  %3399 = vmatprep.mubr.bf16.mxu1 %v6010_v58  ;;  %v5044_v51 = vld [vmem:[%s6885_s7 + $0x540] ss:$16 sps:$4 sm:$0xff]  }
 0x2dd   : > { %3328 = vmatprep.subr.bf16.mxu0 %v4974_v54  ;;  %3369 = vmatprep.subr.bf16.mxu1 %v4977_v55  ;;  %v5047_v54 = vld [vmem:[%s6885_s7 + $0x740] ss:$16 sps:$4 sm:$0xff]   ;;  %v5052_v55 = vld [vmem:[%s6885_s7 + $0x524] ss:$16 sps:$4 sm:$0xff]  }
 0x2df   : > { %3329 = vmatpush1.bf16.msra.mxu0 %v4972_v59  ;;  %3370 = vmatpush1.bf16.msra.mxu1 %v4975_v60  ;;  %v5055_v59 = vld [vmem:[%s6885_s7 + $0x724] ss:$16 sps:$4 sm:$0xff]   ;;  %v5050_v60 = vld [vmem:[%s6885_s7 + $0x520] ss:$16 sps:$4 sm:$0xff]  }
 0x2e0   : > { %3330 = vmatprep.subr.bf16.mxu0 %v4980_v61  ;;  %3371 = vmatprep.subr.bf16.mxu1 %v4983_v62  ;;  %v5053_v61 = vld [vmem:[%s6885_s7 + $0x720] ss:$16 sps:$4 sm:$0xff]   ;;  %v5058_v62 = vld [vmem:[%s6885_s7 + $0x504] ss:$16 sps:$4 sm:$0xff]  }
 0x2e3   : > { %3331 = vmatpush1.bf16.msra.mxu0 %v4978_v63  ;;  %3372 = vmatpush1.bf16.msra.mxu1 %v4981_v0  ;;  %v5061_v63 = vld [vmem:[%s6885_s7 + $0x704] ss:$16 sps:$4 sm:$0xff]   ;;  %v5056_v0 = vld [vmem:[%s6885_s7 + $0x500] ss:$16 sps:$4 sm:$0xff]  }
 0x2e4   : > { %3332 = vmatprep.subr.bf16.mxu0 %v4986_v1  ;;  %3373 = vmatprep.subr.bf16.mxu1 %v4989_v2  ;;  %v5059_v1 = vld [vmem:[%s6885_s7 + $0x700] ss:$16 sps:$4 sm:$0xff]   ;;  %v5064_v2 = vld [vmem:[%s6885_s7 + $0xec] ss:$16 sps:$4 sm:$0xff]  }
 0x2e7   : > { %3333 = vmatpush1.bf16.msra.mxu0 %v4984_v3  ;;  %3374 = vmatpush1.bf16.msra.mxu1 %v4987_v4  ;;  %v5067_v3 = vld [vmem:[%s6885_s7 + $0x2ec] ss:$16 sps:$4 sm:$0xff]   ;;  %v5062_v4 = vld [vmem:[%s6885_s7 + $0xe8] ss:$16 sps:$4 sm:$0xff]  }
 0x2e8   : > { %3334 = vmatprep.subr.bf16.mxu0 %v4992_v5  ;;  %3375 = vmatprep.subr.bf16.mxu1 %v4995_v6  ;;  %v6199_v5 = vpack.c.bf16 %v5980_v46, %v5980_v46  ;;  %v6203_v6 = vpack.c.bf16 %v5982_v47, %v5982_v47  ;;  %v5068_v46 = vld [vmem:[%s6885_s7 + $0xc8] ss:$16 sps:$4 sm:$0xff]  }
 0x2e9   : > { %v5071_v47 = vld [vmem:[%s6885_s7 + $0x2c8] ss:$16 sps:$4 sm:$0xff]  }
 0x2eb   : > { %3335 = vmatpush1.bf16.msra.mxu0 %v4990_v7  ;;  %3376 = vmatpush1.bf16.msra.mxu1 %v4993_v8  ;;  %v5065_v7 = vld [vmem:[%s6885_s7 + $0x2e8] ss:$16 sps:$4 sm:$0xff]   ;;  %v5070_v8 = vld [vmem:[%s6885_s7 + $0xcc] ss:$16 sps:$4 sm:$0xff]  }
 0x2ec   : > { %3336 = vmatprep.subr.bf16.mxu0 %v4998_v9  ;;  %3377 = vmatprep.subr.bf16.mxu1 %v5001_v10  ;;  %v5073_v9 = vld [vmem:[%s6885_s7 + $0x2cc] ss:$16 sps:$4 sm:$0xff]  }
 0x2ed   : > { %v5076_v10 = vld [vmem:[%s6885_s7 + $0xac] ss:$16 sps:$4 sm:$0xff]  }
 0x2ef   : > { %3337 = vmatpush1.bf16.msra.mxu0 %v4996_v11  ;;  %3378 = vmatpush1.bf16.msra.mxu1 %v4999_v12  ;;  %v5074_v11 = vld [vmem:[%s6885_s7 + $0xa8] ss:$16 sps:$4 sm:$0xff]   ;;  %v5082_v12 = vld [vmem:[%s6885_s7 + $0x8c] ss:$16 sps:$4 sm:$0xff]  }
 0x2f0   : > { %3338 = vmatprep.subr.bf16.mxu0 %v5004_v13  ;;  %3379 = vmatprep.subr.bf16.mxu1 %v5007_v14  ;;  %v5085_v13 = vld [vmem:[%s6885_s7 + $0x28c] ss:$16 sps:$4 sm:$0xff]   ;;  %v5080_v14 = vld [vmem:[%s6885_s7 + $0x88] ss:$16 sps:$4 sm:$0xff]  }
 0x2f3   : > { %3339 = vmatpush1.bf16.msra.mxu0 %v5002_v15  ;;  %3380 = vmatpush1.bf16.msra.mxu1 %v5005_v17  ;;  %v5083_v15 = vld [vmem:[%s6885_s7 + $0x288] ss:$16 sps:$4 sm:$0xff]   ;;  %v5088_v17 = vld [vmem:[%s6885_s7 + $0x6c] ss:$16 sps:$4 sm:$0xff]  }
 0x2f4   : > { %3340 = vmatprep.subr.bf16.mxu0 %v5010_v18  ;;  %3381 = vmatprep.subr.bf16.mxu1 %v5013_v19  ;;  %v5091_v18 = vld [vmem:[%s6885_s7 + $0x26c] ss:$16 sps:$4 sm:$0xff]   ;;  %v5086_v19 = vld [vmem:[%s6885_s7 + $0x68] ss:$16 sps:$4 sm:$0xff]  }
 0x2f7   : > { %3341 = vmatpush1.bf16.msra.mxu0 %v5008_v20  ;;  %3382 = vmatpush1.bf16.msra.mxu1 %v5011_v21  ;;  %v5089_v20 = vld [vmem:[%s6885_s7 + $0x268] ss:$16 sps:$4 sm:$0xff]   ;;  %v5094_v21 = vld [vmem:[%s6885_s7 + $0x4c] ss:$16 sps:$4 sm:$0xff]  }
 0x2f8   : > { %3342 = vmatprep.subr.bf16.mxu0 %v5016_v22  ;;  %3383 = vmatprep.subr.bf16.mxu1 %v5019_v23  ;;  %v5097_v22 = vld [vmem:[%s6885_s7 + $0x24c] ss:$16 sps:$4 sm:$0xff]   ;;  %v5092_v23 = vld [vmem:[%s6885_s7 + $0x48] ss:$16 sps:$4 sm:$0xff]  }
 0x2fb   : > { %3343 = vmatpush2.bf16.msra.mxu0 %v5014_v24  ;;  %3384 = vmatpush2.bf16.msra.mxu1 %v5017_v16  ;;  %v5095_v24 = vld [vmem:[%s6885_s7 + $0x248] ss:$16 sps:$4 sm:$0xff]   ;;  %v5100_v16 = vld [vmem:[%s6885_s7 + $0x2c] ss:$16 sps:$4 sm:$0xff]  }
 0x2fc   : > { %3344 = vmatprep.subr.bf16.mxu0 %v5022_v25  ;;  %3385 = vmatprep.subr.bf16.mxu1 %v5025_v26  ;;  %v5103_v25 = vld [vmem:[%s6885_s7 + $0x22c] ss:$16 sps:$4 sm:$0xff]   ;;  %v5098_v26 = vld [vmem:[%s6885_s7 + $0x28] ss:$16 sps:$4 sm:$0xff]  }
 0x2ff   : > { %3345 = vmatpush2.bf16.msra.mxu0 %v5020_v27  ;;  %3386 = vmatpush2.bf16.msra.mxu1 %v5023_v28  ;;  %v5101_v27 = vld [vmem:[%s6885_s7 + $0x228] ss:$16 sps:$4 sm:$0xff]   ;;  %v5106_v28 = vld [vmem:[%s6885_s7 + $0xc] ss:$16 sps:$4 sm:$0xff]  }
 0x300   : > { %3346 = vmatprep.subr.bf16.mxu0 %v5028_v29  ;;  %3387 = vmatprep.subr.bf16.mxu1 %v5031_v31  ;;  %v5109_v29 = vld [vmem:[%s6885_s7 + $0x20c] ss:$16 sps:$4 sm:$0xff]   ;;  %v5104_v31 = vld [vmem:[%s6885_s7 + $0x8] ss:$16 sps:$4 sm:$0xff]  }
 0x303   : > { %3347 = vmatpush2.bf16.msra.mxu0 %v5026_v35  ;;  %3388 = vmatpush2.bf16.msra.mxu1 %v5029_v36  ;;  %v5107_v35 = vld [vmem:[%s6885_s7 + $0x208] ss:$16 sps:$4 sm:$0xff]   ;;  %v5112_v36 = vld [vmem:[%s6885_s7 + $0x1ec] ss:$16 sps:$4 sm:$0xff]  }
 0x304   : > { %3348 = vmatprep.subr.bf16.mxu0 %v5034_v37  ;;  %3389 = vmatprep.subr.bf16.mxu1 %v5037_v38  ;;  %v5115_v37 = vld [vmem:[%s6885_s7 + $0x3ec] ss:$16 sps:$4 sm:$0xff]   ;;  %v5110_v38 = vld [vmem:[%s6885_s7 + $0x1e8] ss:$16 sps:$4 sm:$0xff]  }
 0x307   : > { %3349 = vmatpush2.bf16.msra.mxu0 %v5032_v39  ;;  %3390 = vmatpush2.bf16.msra.mxu1 %v5035_v40  ;;  %v5113_v39 = vld [vmem:[%s6885_s7 + $0x3e8] ss:$16 sps:$4 sm:$0xff]   ;;  %v5118_v40 = vld [vmem:[%s6885_s7 + $0x1cc] ss:$16 sps:$4 sm:$0xff]  }
 0x308   : > { %3350 = vmatprep.subr.bf16.mxu0 %v5040_v41  ;;  %3391 = vmatprep.subr.bf16.mxu1 %v5043_v42  ;;  %v5121_v41 = vld [vmem:[%s6885_s7 + $0x3cc] ss:$16 sps:$4 sm:$0xff]   ;;  %v5116_v42 = vld [vmem:[%s6885_s7 + $0x1c8] ss:$16 sps:$4 sm:$0xff]  }
 0x30b   : > { %3351 = vmatpush2.bf16.msra.mxu0 %v5038_v43  ;;  %3392 = vmatpush2.bf16.msra.mxu1 %v5041_v44  ;;  %v5119_v43 = vld [vmem:[%s6885_s7 + $0x3c8] ss:$16 sps:$4 sm:$0xff]   ;;  %v5124_v44 = vld [vmem:[%s6885_s7 + $0x1ac] ss:$16 sps:$4 sm:$0xff]  }
 0x30c   : > { %3352 = vmatprep.subr.bf16.mxu0 %v5046_v45  ;;  %3393 = vmatprep.subr.bf16.mxu1 %v5049_v50  ;;  %v5127_v45 = vld [vmem:[%s6885_s7 + $0x3ac] ss:$16 sps:$4 sm:$0xff]   ;;  %v5122_v50 = vld [vmem:[%s6885_s7 + $0x1a8] ss:$16 sps:$4 sm:$0xff]  }
 0x30f   : > { %3353 = vmatpush2.bf16.msra.mxu0 %v5044_v51  ;;  %3394 = vmatpush2.bf16.msra.mxu1 %v5047_v54  ;;  %v5125_v51 = vld [vmem:[%s6885_s7 + $0x3a8] ss:$16 sps:$4 sm:$0xff]   ;;  %v5130_v54 = vld [vmem:[%s6885_s7 + $0x18c] ss:$16 sps:$4 sm:$0xff]  }
 0x310   : > { %3354 = vmatprep.subr.bf16.mxu0 %v5052_v55  ;;  %3395 = vmatprep.subr.bf16.mxu1 %v5055_v59  ;;  %v5133_v55 = vld [vmem:[%s6885_s7 + $0x38c] ss:$16 sps:$4 sm:$0xff]   ;;  %v5128_v59 = vld [vmem:[%s6885_s7 + $0x188] ss:$16 sps:$4 sm:$0xff]  }
 0x313   : > { %3355 = vmatpush2.bf16.msra.mxu0 %v5050_v60  ;;  %3396 = vmatpush2.bf16.msra.mxu1 %v5053_v61  ;;  %v5131_v60 = vld [vmem:[%s6885_s7 + $0x388] ss:$16 sps:$4 sm:$0xff]   ;;  %v5136_v61 = vld [vmem:[%s6885_s7 + $0x16c] ss:$16 sps:$4 sm:$0xff]  }
 0x314   : > { %3356 = vmatprep.subr.bf16.mxu0 %v5058_v62  ;;  %3397 = vmatprep.subr.bf16.mxu1 %v5061_v63  ;;  %v5139_v62 = vld [vmem:[%s6885_s7 + $0x36c] ss:$16 sps:$4 sm:$0xff]   ;;  %v5134_v63 = vld [vmem:[%s6885_s7 + $0x168] ss:$16 sps:$4 sm:$0xff]  }
 0x317   : > { %3357 = vmatpush2.bf16.msra.mxu0 %v5056_v0  ;;  %3398 = vmatpush2.bf16.msra.mxu1 %v5059_v1  ;;  %v5137_v0 = vld [vmem:[%s6885_s7 + $0x368] ss:$16 sps:$4 sm:$0xff]   ;;  %v5142_v1 = vld [vmem:[%s6885_s7 + $0x14c] ss:$16 sps:$4 sm:$0xff]  }
 0x318   : > { %3408 = vmatprep.subr.bf16.mxu0 %v5064_v2  ;;  %3449 = vmatprep.subr.bf16.mxu1 %v5067_v3  ;;  %v5145_v2 = vld [vmem:[%s6885_s7 + $0x34c] ss:$16 sps:$4 sm:$0xff]   ;;  %v5140_v3 = vld [vmem:[%s6885_s7 + $0x148] ss:$16 sps:$4 sm:$0xff]  }
 0x31a   : > { %3359 = vmatmul.mubr.bf16.vlgmr.msra.gmra.mxu0 %v6199_v5  ;;  %3400 = vmatmul.mubr.bf16.vlgmr.msra.gmra.mxu1 %v6203_v6 }
 0x31b   : > { %3409 = vmatpush1.bf16.msra.mxu0 %v5062_v4  ;;  %3440 = vmatprep.mubr.bf16.mxu0 %v5984_v48  ;;  %v5079_v48 = vld [vmem:[%s6885_s7 + $0x2ac] ss:$16 sps:$4 sm:$0xff]   ;;  %v5143_v4 = vld [vmem:[%s6885_s7 + $0x348] ss:$16 sps:$4 sm:$0xff]  }
 0x31c   : > { %3450 = vmatpush1.bf16.msra.mxu1 %v5065_v7  ;;  %3481 = vmatprep.mubr.bf16.mxu1 %v5986_v49  ;;  %v5077_v49 = vld [vmem:[%s6885_s7 + $0x2a8] ss:$16 sps:$4 sm:$0xff]   ;;  %v5148_v7 = vld [vmem:[%s6885_s7 + $0x12c] ss:$16 sps:$4 sm:$0xff]  }
 0x31d   : > { %3410 = vmatprep.subr.bf16.mxu0 %v5070_v8  ;;  %3451 = vmatprep.subr.bf16.mxu1 %v5073_v9  ;;  %v5151_v8 = vld [vmem:[%s6885_s7 + $0x32c] ss:$16 sps:$4 sm:$0xff]   ;;  %v5146_v9 = vld [vmem:[%s6885_s7 + $0x128] ss:$16 sps:$4 sm:$0xff]  }
 0x31f   : > { %3411 = vmatpush1.bf16.msra.mxu0 %v5068_v46  ;;  %v5149_v46 = vld [vmem:[%s6885_s7 + $0x328] ss:$16 sps:$4 sm:$0xff]  }
 0x320   : > { %3452 = vmatpush1.bf16.msra.mxu1 %v5071_v47  ;;  %3412 = vmatprep.subr.bf16.mxu0 %v5076_v10  ;;  %v5154_v47 = vld [vmem:[%s6885_s7 + $0x10c] ss:$16 sps:$4 sm:$0xff]  }
 0x321   : > { %3453 = vmatprep.subr.bf16.mxu1 %v5079_v48  ;;  %v5157_v10 = vld [vmem:[%s6885_s7 + $0x30c] ss:$16 sps:$4 sm:$0xff]   ;;  %v5152_v48 = vld [vmem:[%s6885_s7 + $0x108] ss:$16 sps:$4 sm:$0xff]  }
 0x323   : > { %3413 = vmatpush1.bf16.msra.mxu0 %v5074_v11  ;;  %v5155_v11 = vld [vmem:[%s6885_s7 + $0x308] ss:$16 sps:$4 sm:$0xff]  }
 0x324   : > { %3454 = vmatpush1.bf16.msra.mxu1 %v5077_v49  ;;  %3414 = vmatprep.subr.bf16.mxu0 %v5082_v12  ;;  %v5160_v49 = vld [vmem:[%s6885_s7 + $0x4ec] ss:$16 sps:$4 sm:$0xff]  }
 0x325   : > { %3455 = vmatprep.subr.bf16.mxu1 %v5085_v13  ;;  %v5163_v12 = vld [vmem:[%s6885_s7 + $0x6ec] ss:$16 sps:$4 sm:$0xff]   ;;  %v5158_v13 = vld [vmem:[%s6885_s7 + $0x4e8] ss:$16 sps:$4 sm:$0xff]  }
 0x327   : > { %3415 = vmatpush1.bf16.msra.mxu0 %v5080_v14  ;;  %v5161_v14 = vld [vmem:[%s6885_s7 + $0x6e8] ss:$16 sps:$4 sm:$0xff]  }
 0x328   : > { %3456 = vmatpush1.bf16.msra.mxu1 %v5083_v15  ;;  %3416 = vmatprep.subr.bf16.mxu0 %v5088_v17  ;;  %v5166_v15 = vld [vmem:[%s6885_s7 + $0x4cc] ss:$16 sps:$4 sm:$0xff]  }
 0x329   : > { %3457 = vmatprep.subr.bf16.mxu1 %v5091_v18  ;;  %v5169_v17 = vld [vmem:[%s6885_s7 + $0x6cc] ss:$16 sps:$4 sm:$0xff]   ;;  %v5164_v18 = vld [vmem:[%s6885_s7 + $0x4c8] ss:$16 sps:$4 sm:$0xff]  }
 0x32b   : > { %3417 = vmatpush1.bf16.msra.mxu0 %v5086_v19  ;;  %v5167_v19 = vld [vmem:[%s6885_s7 + $0x6c8] ss:$16 sps:$4 sm:$0xff]  }
 0x32c   : > { %3458 = vmatpush1.bf16.msra.mxu1 %v5089_v20  ;;  %3418 = vmatprep.subr.bf16.mxu0 %v5094_v21  ;;  %v5173_v20 = vld [vmem:[%s6885_s7 + $0x6a8] ss:$16 sps:$4 sm:$0xff]   ;;  %v5181_v21 = vld [vmem:[%s6885_s7 + $0x68c] ss:$16 sps:$4 sm:$0xff]  }
 0x32d   : > { %3459 = vmatprep.subr.bf16.mxu1 %v5097_v22  ;;  %v5176_v22 = vld [vmem:[%s6885_s7 + $0x488] ss:$16 sps:$4 sm:$0xff]  }
 0x32f   : > { %3419 = vmatpush1.bf16.msra.mxu0 %v5092_v23  ;;  %v5179_v23 = vld [vmem:[%s6885_s7 + $0x688] ss:$16 sps:$4 sm:$0xff]  }
 0x330   : > { %3460 = vmatpush1.bf16.msra.mxu1 %v5095_v24  ;;  %3420 = vmatprep.subr.bf16.mxu0 %v5100_v16  ;;  %v5184_v24 = vld [vmem:[%s6885_s7 + $0x46c] ss:$16 sps:$4 sm:$0xff]  }
 0x331   : > { %3461 = vmatprep.subr.bf16.mxu1 %v5103_v25  ;;  %v5187_v16 = vld [vmem:[%s6885_s7 + $0x66c] ss:$16 sps:$4 sm:$0xff]   ;;  %v5182_v25 = vld [vmem:[%s6885_s7 + $0x468] ss:$16 sps:$4 sm:$0xff]  }
 0x333   : > { %3421 = vmatpush1.bf16.msra.mxu0 %v5098_v26  ;;  %v5185_v26 = vld [vmem:[%s6885_s7 + $0x668] ss:$16 sps:$4 sm:$0xff]  }
 0x334   : > { %3462 = vmatpush1.bf16.msra.mxu1 %v5101_v27  ;;  %3422 = vmatprep.subr.bf16.mxu0 %v5106_v28  ;;  %v5190_v27 = vld [vmem:[%s6885_s7 + $0x44c] ss:$16 sps:$4 sm:$0xff]  }
 0x335   : > { %3463 = vmatprep.subr.bf16.mxu1 %v5109_v29  ;;  %v5193_v28 = vld [vmem:[%s6885_s7 + $0x64c] ss:$16 sps:$4 sm:$0xff]   ;;  %v5188_v29 = vld [vmem:[%s6885_s7 + $0x448] ss:$16 sps:$4 sm:$0xff]  }
 0x337   : > { %3423 = vmatpush1.bf16.msra.mxu0 %v5104_v31  ;;  %v5191_v31 = vld [vmem:[%s6885_s7 + $0x648] ss:$16 sps:$4 sm:$0xff]  }
 0x338   : > { %3464 = vmatpush1.bf16.msra.mxu1 %v5107_v35  ;;  %3424 = vmatprep.subr.bf16.mxu0 %v5112_v36  ;;  %v5196_v35 = vld [vmem:[%s6885_s7 + $0x42c] ss:$16 sps:$4 sm:$0xff]  }
 0x339   : > { %3465 = vmatprep.subr.bf16.mxu1 %v5115_v37  ;;  %v5199_v36 = vld [vmem:[%s6885_s7 + $0x62c] ss:$16 sps:$4 sm:$0xff]   ;;  %v5194_v37 = vld [vmem:[%s6885_s7 + $0x428] ss:$16 sps:$4 sm:$0xff]  }
 0x33b   : > { %3425 = vmatpush2.bf16.msra.mxu0 %v5110_v38  ;;  %v5197_v38 = vld [vmem:[%s6885_s7 + $0x628] ss:$16 sps:$4 sm:$0xff]  }
 0x33c   : > { %3466 = vmatpush2.bf16.msra.mxu1 %v5113_v39  ;;  %3426 = vmatprep.subr.bf16.mxu0 %v5118_v40  ;;  %v5202_v39 = vld [vmem:[%s6885_s7 + $0x40c] ss:$16 sps:$4 sm:$0xff]  }
 0x33d   : > { %3467 = vmatprep.subr.bf16.mxu1 %v5121_v41  ;;  %v5205_v40 = vld [vmem:[%s6885_s7 + $0x60c] ss:$16 sps:$4 sm:$0xff]   ;;  %v5200_v41 = vld [vmem:[%s6885_s7 + $0x408] ss:$16 sps:$4 sm:$0xff]  }
 0x33f   : > { %3427 = vmatpush2.bf16.msra.mxu0 %v5116_v42  ;;  %v5203_v42 = vld [vmem:[%s6885_s7 + $0x608] ss:$16 sps:$4 sm:$0xff]  }
 0x340   : > { %3468 = vmatpush2.bf16.msra.mxu1 %v5119_v43  ;;  %3428 = vmatprep.subr.bf16.mxu0 %v5124_v44  ;;  %v5208_v43 = vld [vmem:[%s6885_s7 + $0x5ec] ss:$16 sps:$4 sm:$0xff]  }
 0x341   : > { %3469 = vmatprep.subr.bf16.mxu1 %v5127_v45  ;;  %v5211_v44 = vld [vmem:[%s6885_s7 + $0x7ec] ss:$16 sps:$4 sm:$0xff]   ;;  %v5206_v45 = vld [vmem:[%s6885_s7 + $0x5e8] ss:$16 sps:$4 sm:$0xff]  }
 0x343   : > { %3429 = vmatpush2.bf16.msra.mxu0 %v5122_v50  ;;  %v5209_v50 = vld [vmem:[%s6885_s7 + $0x7e8] ss:$16 sps:$4 sm:$0xff]  }
 0x344   : > { %3470 = vmatpush2.bf16.msra.mxu1 %v5125_v51  ;;  %3430 = vmatprep.subr.bf16.mxu0 %v5130_v54  ;;  %v5214_v51 = vld [vmem:[%s6885_s7 + $0x5cc] ss:$16 sps:$4 sm:$0xff]  }
 0x345   : > { %3471 = vmatprep.subr.bf16.mxu1 %v5133_v55  ;;  %v5217_v54 = vld [vmem:[%s6885_s7 + $0x7cc] ss:$16 sps:$4 sm:$0xff]   ;;  %v5212_v55 = vld [vmem:[%s6885_s7 + $0x5c8] ss:$16 sps:$4 sm:$0xff]  }
 0x347   : > { %3431 = vmatpush2.bf16.msra.mxu0 %v5128_v59  ;;  %v5215_v59 = vld [vmem:[%s6885_s7 + $0x7c8] ss:$16 sps:$4 sm:$0xff]  }
 0x348   : > { %3472 = vmatpush2.bf16.msra.mxu1 %v5131_v60  ;;  %3432 = vmatprep.subr.bf16.mxu0 %v5136_v61  ;;  %v5220_v60 = vld [vmem:[%s6885_s7 + $0x5ac] ss:$16 sps:$4 sm:$0xff]  }
 0x349   : > { %3473 = vmatprep.subr.bf16.mxu1 %v5139_v62  ;;  %v5223_v61 = vld [vmem:[%s6885_s7 + $0x7ac] ss:$16 sps:$4 sm:$0xff]   ;;  %v5218_v62 = vld [vmem:[%s6885_s7 + $0x5a8] ss:$16 sps:$4 sm:$0xff]  }
 0x34b   : > { %3433 = vmatpush2.bf16.msra.mxu0 %v5134_v63  ;;  %v5221_v63 = vld [vmem:[%s6885_s7 + $0x7a8] ss:$16 sps:$4 sm:$0xff]  }
 0x34c   : > { %3474 = vmatpush2.bf16.msra.mxu1 %v5137_v0  ;;  %3434 = vmatprep.subr.bf16.mxu0 %v5142_v1  ;;  %v5226_v0 = vld [vmem:[%s6885_s7 + $0x58c] ss:$16 sps:$4 sm:$0xff]  }
 0x34d   : > { %3475 = vmatprep.subr.bf16.mxu1 %v5145_v2  ;;  %v5229_v1 = vld [vmem:[%s6885_s7 + $0x78c] ss:$16 sps:$4 sm:$0xff]   ;;  %v5224_v2 = vld [vmem:[%s6885_s7 + $0x588] ss:$16 sps:$4 sm:$0xff]  }
 0x34f   : > { %3435 = vmatpush2.bf16.msra.mxu0 %v5140_v3  ;;  %v5227_v3 = vld [vmem:[%s6885_s7 + $0x788] ss:$16 sps:$4 sm:$0xff]  }
 0x350   : > { %3476 = vmatpush2.bf16.msra.mxu1 %v5143_v4  ;;  %3436 = vmatprep.subr.bf16.mxu0 %v5148_v7  ;;  %v5232_v4 = vld [vmem:[%s6885_s7 + $0x56c] ss:$16 sps:$4 sm:$0xff]  }
 0x351   : > { %3477 = vmatprep.subr.bf16.mxu1 %v5151_v8  ;;  %v5235_v7 = vld [vmem:[%s6885_s7 + $0x76c] ss:$16 sps:$4 sm:$0xff]   ;;  %v5230_v8 = vld [vmem:[%s6885_s7 + $0x568] ss:$16 sps:$4 sm:$0xff]  }
 0x353   : > { %3437 = vmatpush2.bf16.msra.mxu0 %v5146_v9  ;;  %v5233_v9 = vld [vmem:[%s6885_s7 + $0x768] ss:$16 sps:$4 sm:$0xff]  }
 0x354   : > { %3478 = vmatpush2.bf16.msra.mxu1 %v5149_v46  ;;  %3438 = vmatprep.subr.bf16.mxu0 %v5154_v47  ;;  %v5238_v46 = vld [vmem:[%s6885_s7 + $0x54c] ss:$16 sps:$4 sm:$0xff]  }
 0x355   : > { %3479 = vmatprep.subr.bf16.mxu1 %v5157_v10  ;;  %v5241_v47 = vld [vmem:[%s6885_s7 + $0x74c] ss:$16 sps:$4 sm:$0xff]   ;;  %v5236_v10 = vld [vmem:[%s6885_s7 + $0x548] ss:$16 sps:$4 sm:$0xff]  }
 0x357   : > { %3439 = vmatpush2.bf16.msra.mxu0 %v5152_v48  ;;  %v5239_v48 = vld [vmem:[%s6885_s7 + $0x748] ss:$16 sps:$4 sm:$0xff]  }
 0x358   : > { %3480 = vmatpush2.bf16.msra.mxu1 %v5155_v11  ;;  %3490 = vmatprep.subr.bf16.mxu0 %v5160_v49  ;;  %v5244_v11 = vld [vmem:[%s6885_s7 + $0x52c] ss:$16 sps:$4 sm:$0xff]  }
 0x359   : > { %3531 = vmatprep.subr.bf16.mxu1 %v5163_v12  ;;  %v5247_v49 = vld [vmem:[%s6885_s7 + $0x72c] ss:$16 sps:$4 sm:$0xff]   ;;  %v5242_v12 = vld [vmem:[%s6885_s7 + $0x528] ss:$16 sps:$4 sm:$0xff]  }
 0x35a   : > { %3441 = vmatmul.mubr.bf16.vlgmr.msra.gmra.mxu0 %v5994_v52  ;;  %v5172_v52 = vld [vmem:[%s6885_s7 + $0x4ac] ss:$16 sps:$4 sm:$0xff]  }
 0x35b   : > { %3482 = vmatmul.mubr.bf16.vlgmr.msra.gmra.mxu1 %v5996_v53  ;;  %3491 = vmatpush1.bf16.msra.mxu0 %v5158_v13  ;;  %v5175_v53 = vld [vmem:[%s6885_s7 + $0x6ac] ss:$16 sps:$4 sm:$0xff]   ;;  %v5245_v13 = vld [vmem:[%s6885_s7 + $0x728] ss:$16 sps:$4 sm:$0xff]  }
 0x35c   : > { %3522 = vmatprep.mubr.bf16.mxu0 %v6008_v57  ;;  %3532 = vmatpush1.bf16.msra.mxu1 %v5161_v14  ;;  %v5170_v57 = vld [vmem:[%s6885_s7 + $0x4a8] ss:$16 sps:$4 sm:$0xff]   ;;  %v5250_v14 = vld [vmem:[%s6885_s7 + $0x50c] ss:$16 sps:$4 sm:$0xff]  }
 0x35d   : > { %3563 = vmatprep.mubr.bf16.mxu1 %v6010_v58  ;;  %3492 = vmatprep.subr.bf16.mxu0 %v5166_v15  ;;  %v5178_v58 = vld [vmem:[%s6885_s7 + $0x48c] ss:$16 sps:$4 sm:$0xff]  }
 0x35e   : > { %3533 = vmatprep.subr.bf16.mxu1 %v5169_v17  ;;  %v5253_v15 = vld [vmem:[%s6885_s7 + $0x70c] ss:$16 sps:$4 sm:$0xff]   ;;  %v5248_v17 = vld [vmem:[%s6885_s7 + $0x508] ss:$16 sps:$4 sm:$0xff]  }
 0x35f   : > { %3493 = vmatpush1.bf16.msra.mxu0 %v5164_v18  ;;  %v5251_v18 = vld [vmem:[%s6885_s7 + $0x708] ss:$16 sps:$4 sm:$0xff]  }
 0x360   : > { %3534 = vmatpush1.bf16.msra.mxu1 %v5167_v19  ;;  %3494 = vmatprep.subr.bf16.mxu0 %v5172_v52  ;;  %v5256_v19 = vld [vmem:[%s6887_s9 + $0x74] ss:$8 sps:$4 sm:$0xff]   ;;  %v5254_v52 = vld [vmem:[%s6887_s9 + $0x70] ss:$8 sps:$4 sm:$0xff]  }
 0x361   : > { %3535 = vmatprep.subr.bf16.mxu1 %v5175_v53  ;;  %v5259_v53 = vld [vmem:[%s6887_s9 + $0x64] ss:$8 sps:$4 sm:$0xff]  }
 0x363   : > { %3495 = vmatpush1.bf16.msra.mxu0 %v5170_v57 }
 0x364   : > { %3536 = vmatpush1.bf16.msra.mxu1 %v5173_v20  ;;  %3496 = vmatprep.subr.bf16.mxu0 %v5178_v58  ;;  %v5257_v58 = vld [vmem:[%s6887_s9 + $0x60] ss:$8 sps:$4 sm:$0xff]  }
 0x365   : > { %3537 = vmatprep.subr.bf16.mxu1 %v5181_v21 }
 0x367   : > { %3497 = vmatpush1.bf16.msra.mxu0 %v5176_v22 }
 0x368   : > { %3538 = vmatpush1.bf16.msra.mxu1 %v5179_v23  ;;  %3498 = vmatprep.subr.bf16.mxu0 %v5184_v24 }
 0x369   : > { %3539 = vmatprep.subr.bf16.mxu1 %v5187_v16 }
 0x36b   : > { %3499 = vmatpush1.bf16.msra.mxu0 %v5182_v25 }
 0x36c   : > { %3540 = vmatpush1.bf16.msra.mxu1 %v5185_v26  ;;  %3500 = vmatprep.subr.bf16.mxu0 %v5190_v27  ;;  %v5265_v26 = vld [vmem:[%s6887_s9 + $0x44] ss:$8 sps:$4 sm:$0xff]   ;;  %v5302_v27 = vld [vmem:[%s6887_s9 + $0x170] ss:$8 sps:$4 sm:$0xff]  }
 0x36d   : > { %3541 = vmatprep.subr.bf16.mxu1 %v5193_v28  ;;  %v5304_v28 = vld [vmem:[%s6887_s9 + $0x174] ss:$8 sps:$4 sm:$0xff]  }
 0x36f   : > { %3501 = vmatpush1.bf16.msra.mxu0 %v5188_v29  ;;  %v5307_v29 = vld [vmem:[%s6887_s9 + $0x164] ss:$8 sps:$4 sm:$0xff]  }
 0x370   : > { %3542 = vmatpush1.bf16.msra.mxu1 %v5191_v31  ;;  %3502 = vmatprep.subr.bf16.mxu0 %v5196_v35  ;;  %v5263_v31 = vld [vmem:[%s6887_s9 + $0x40] ss:$8 sps:$4 sm:$0xff]   ;;  %v5268_v35 = vld [vmem:[%s6887_s9 + $0x34] ss:$8 sps:$4 sm:$0xff]  }
 0x371   : > { %3543 = vmatprep.subr.bf16.mxu1 %v5199_v36  ;;  %v5305_v36 = vld [vmem:[%s6887_s9 + $0x160] ss:$8 sps:$4 sm:$0xff]  }
 0x373   : > { %3503 = vmatpush1.bf16.msra.mxu0 %v5194_v37  ;;  %v5310_v37 = vld [vmem:[%s6887_s9 + $0x154] ss:$8 sps:$4 sm:$0xff]  }
 0x374   : > { %3544 = vmatpush1.bf16.msra.mxu1 %v5197_v38  ;;  %3504 = vmatprep.subr.bf16.mxu0 %v5202_v39  ;;  %v5266_v38 = vld [vmem:[%s6887_s9 + $0x30] ss:$8 sps:$4 sm:$0xff]   ;;  %v5271_v39 = vld [vmem:[%s6887_s9 + $0x24] ss:$8 sps:$4 sm:$0xff]  }
 0x375   : > { %3545 = vmatprep.subr.bf16.mxu1 %v5205_v40  ;;  %v5308_v40 = vld [vmem:[%s6887_s9 + $0x150] ss:$8 sps:$4 sm:$0xff]  }
 0x377   : > { %3505 = vmatpush1.bf16.msra.mxu0 %v5200_v41  ;;  %v5313_v41 = vld [vmem:[%s6887_s9 + $0x144] ss:$8 sps:$4 sm:$0xff]  }
 0x378   : > { %3546 = vmatpush1.bf16.msra.mxu1 %v5203_v42  ;;  %3506 = vmatprep.subr.bf16.mxu0 %v5208_v43  ;;  %v5269_v42 = vld [vmem:[%s6887_s9 + $0x20] ss:$8 sps:$4 sm:$0xff]   ;;  %v5274_v43 = vld [vmem:[%s6887_s9 + $0x14] ss:$8 sps:$4 sm:$0xff]  }
 0x379   : > { %3547 = vmatprep.subr.bf16.mxu1 %v5211_v44  ;;  %v5311_v44 = vld [vmem:[%s6887_s9 + $0x140] ss:$8 sps:$4 sm:$0xff]  }
 0x37b   : > { %3507 = vmatpush2.bf16.msra.mxu0 %v5206_v45  ;;  %v5316_v45 = vld [vmem:[%s6887_s9 + $0x134] ss:$8 sps:$4 sm:$0xff]  }
 0x37c   : > { %3548 = vmatpush2.bf16.msra.mxu1 %v5209_v50  ;;  %3508 = vmatprep.subr.bf16.mxu0 %v5214_v51  ;;  %v5272_v50 = vld [vmem:[%s6887_s9 + $0x10] ss:$8 sps:$4 sm:$0xff]   ;;  %v5277_v51 = vld [vmem:[%s6887_s9 + $0x4] ss:$8 sps:$4 sm:$0xff]  }
 0x37d   : > { %3549 = vmatprep.subr.bf16.mxu1 %v5217_v54  ;;  %v5314_v54 = vld [vmem:[%s6887_s9 + $0x130] ss:$8 sps:$4 sm:$0xff]  }
 0x37f   : > { %3509 = vmatpush2.bf16.msra.mxu0 %v5212_v55  ;;  %v5319_v55 = vld [vmem:[%s6887_s9 + $0x124] ss:$8 sps:$4 sm:$0xff]  }
 0x380   : > { %3550 = vmatpush2.bf16.msra.mxu1 %v5215_v59  ;;  %3510 = vmatprep.subr.bf16.mxu0 %v5220_v60  ;;  %v5275_v59 = vld [vmem:[%s6887_s9] ss:$8 sps:$4 sm:$0xff]   ;;  %v5280_v60 = vld [vmem:[%s6887_s9 + $0xf4] ss:$8 sps:$4 sm:$0xff]  }
 0x381   : > { %3551 = vmatprep.subr.bf16.mxu1 %v5223_v61  ;;  %v5317_v61 = vld [vmem:[%s6887_s9 + $0x120] ss:$8 sps:$4 sm:$0xff]  }
 0x383   : > { %3511 = vmatpush2.bf16.msra.mxu0 %v5218_v62  ;;  %v5322_v62 = vld [vmem:[%s6887_s9 + $0x114] ss:$8 sps:$4 sm:$0xff]  }
 0x384   : > { %3552 = vmatpush2.bf16.msra.mxu1 %v5221_v63  ;;  %3512 = vmatprep.subr.bf16.mxu0 %v5226_v0  ;;  %v5278_v63 = vld [vmem:[%s6887_s9 + $0xf0] ss:$8 sps:$4 sm:$0xff]   ;;  %v5283_v0 = vld [vmem:[%s6887_s9 + $0xe4] ss:$8 sps:$4 sm:$0xff]  }
 0x385   : > { %3553 = vmatprep.subr.bf16.mxu1 %v5229_v1  ;;  %v5320_v1 = vld [vmem:[%s6887_s9 + $0x110] ss:$8 sps:$4 sm:$0xff]  }
 0x387   : > { %3513 = vmatpush2.bf16.msra.mxu0 %v5224_v2  ;;  %v5325_v2 = vld [vmem:[%s6887_s9 + $0x104] ss:$8 sps:$4 sm:$0xff]  }
 0x388   : > { %3554 = vmatpush2.bf16.msra.mxu1 %v5227_v3  ;;  %3514 = vmatprep.subr.bf16.mxu0 %v5232_v4  ;;  %v5281_v3 = vld [vmem:[%s6887_s9 + $0xe0] ss:$8 sps:$4 sm:$0xff]   ;;  %v5286_v4 = vld [vmem:[%s6887_s9 + $0xd4] ss:$8 sps:$4 sm:$0xff]  }
 0x389   : > { %3555 = vmatprep.subr.bf16.mxu1 %v5235_v7  ;;  %v5323_v7 = vld [vmem:[%s6887_s9 + $0x100] ss:$8 sps:$4 sm:$0xff]  }
 0x38b   : > { %3515 = vmatpush2.bf16.msra.mxu0 %v5230_v8  ;;  %v5328_v8 = vld [vmem:[%s6887_s9 + $0x1f4] ss:$8 sps:$4 sm:$0xff]  }
 0x38c   : > { %3556 = vmatpush2.bf16.msra.mxu1 %v5233_v9  ;;  %3516 = vmatprep.subr.bf16.mxu0 %v5238_v46  ;;  %v5284_v9 = vld [vmem:[%s6887_s9 + $0xd0] ss:$8 sps:$4 sm:$0xff]   ;;  %v5289_v46 = vld [vmem:[%s6887_s9 + $0xc4] ss:$8 sps:$4 sm:$0xff]  }
 0x38d   : > { %3557 = vmatprep.subr.bf16.mxu1 %v5241_v47  ;;  %v5326_v47 = vld [vmem:[%s6887_s9 + $0x1f0] ss:$8 sps:$4 sm:$0xff]  }
 0x38f   : > { %3517 = vmatpush2.bf16.msra.mxu0 %v5236_v10  ;;  %v5331_v10 = vld [vmem:[%s6887_s9 + $0x1e4] ss:$8 sps:$4 sm:$0xff]  }
 0x390   : > { %3558 = vmatpush2.bf16.msra.mxu1 %v5239_v48  ;;  %3518 = vmatprep.subr.bf16.mxu0 %v5244_v11  ;;  %v5287_v48 = vld [vmem:[%s6887_s9 + $0xc0] ss:$8 sps:$4 sm:$0xff]   ;;  %v5292_v11 = vld [vmem:[%s6887_s9 + $0xb4] ss:$8 sps:$4 sm:$0xff]  }
 0x391   : > { %3559 = vmatprep.subr.bf16.mxu1 %v5247_v49  ;;  %v5329_v49 = vld [vmem:[%s6887_s9 + $0x1e0] ss:$8 sps:$4 sm:$0xff]  }
 0x393   : > { %3519 = vmatpush2.bf16.msra.mxu0 %v5242_v12  ;;  %v5334_v12 = vld [vmem:[%s6887_s9 + $0x1d4] ss:$8 sps:$4 sm:$0xff]  }
 0x394   : > { %3560 = vmatpush2.bf16.msra.mxu1 %v5245_v13  ;;  %3520 = vmatprep.subr.bf16.mxu0 %v5250_v14  ;;  %v5290_v13 = vld [vmem:[%s6887_s9 + $0xb0] ss:$8 sps:$4 sm:$0xff]   ;;  %v5295_v14 = vld [vmem:[%s6887_s9 + $0xa4] ss:$8 sps:$4 sm:$0xff]  }
 0x395   : > { %3561 = vmatprep.subr.bf16.mxu1 %v5253_v15  ;;  %v5332_v15 = vld [vmem:[%s6887_s9 + $0x1d0] ss:$8 sps:$4 sm:$0xff]  }
 0x397   : > { %3521 = vmatpush2.bf16.msra.mxu0 %v5248_v17  ;;  %v5337_v17 = vld [vmem:[%s6887_s9 + $0x1c4] ss:$8 sps:$4 sm:$0xff]  }
 0x398   : > { %3562 = vmatpush2.bf16.msra.mxu1 %v5251_v18  ;;  %3980 = vmatprep.subr.bf16.mxu0 %v5256_v19  ;;  %v5293_v18 = vld [vmem:[%s6887_s9 + $0xa0] ss:$8 sps:$4 sm:$0xff]   ;;  %v5298_v19 = vld [vmem:[%s6887_s9 + $0x94] ss:$8 sps:$4 sm:$0xff]  }
 0x399   : > { %4021 = vmatprep.subr.bf16.mxu1 %v5304_v28 }
 0x39a   : > { %3523 = vmatmul.mubr.bf16.vlgmr.msra.gmra.mxu0 %v6199_v5  ;;  %v6598_v57 = vpop.f32.mrf.mxu0  ;;  %v6600_v20 = vpop.f32.mrf.mxu1  ;;  %v5262_v5 = vld [vmem:[%s6887_s9 + $0x54] ss:$8 sps:$4 sm:$0xff]  }
 0x39b   : > { %3564 = vmatmul.mubr.bf16.vlgmr.msra.gmra.mxu1 %v6203_v6  ;;  %3981 = vmatpush1.bf16.msra.mxu0 %v5254_v52  ;;  %v5260_v6 = vld [vmem:[%s6887_s9 + $0x50] ss:$8 sps:$4 sm:$0xff]   ;;  %v5335_v52 = vld [vmem:[%s6887_s9 + $0x1c0] ss:$8 sps:$4 sm:$0xff]  }
 0x39c   : > { %v6606_v21 = vpop.f32.mrf.mxu0  ;;  %v6608_v22 = vpop.f32.mrf.mxu1  ;;  %3982 = vmatprep.subr.bf16.mxu0 %v5259_v53  ;;  %4022 = vmatpush1.bf16.msra.mxu1 %v5302_v27  ;;  %v5340_v53 = vld [vmem:[%s6887_s9 + $0x1b4] ss:$8 sps:$4 sm:$0xff]  }
 0x39d   : > { %4023 = vmatprep.subr.bf16.mxu1 %v5307_v29 }
 0x39e   : > { %v3282_v23 = vpop.f32.mrf.mxu0  ;;  %v3323_v24 = vpop.f32.mrf.mxu1 }
 0x39f   : > { %3983 = vmatpush1.bf16.msra.mxu0 %v5257_v58  ;;  %v6763_v58 = vld [vmem:[%s6886_s8] sm:$0xf]  ;;  %v5301_v23 = vld [vmem:[%s6887_s9 + $0x84] ss:$8 sps:$4 sm:$0xff]   ;;  %v5338_v24 = vld [vmem:[%s6887_s9 + $0x1b0] ss:$8 sps:$4 sm:$0xff]  }
 0x3a0   : > { %v3283_v16 = vpop.f32.mrf.mxu0  ;;  %v3324_v25 = vpop.f32.mrf.mxu1  ;;  %3984 = vmatprep.subr.bf16.mxu0 %v5262_v5  ;;  %4024 = vmatpush1.bf16.msra.mxu1 %v5305_v36  ;;  %v5296_v5 = vld [vmem:[%s6887_s9 + $0x90] ss:$8 sps:$4 sm:$0xff]  }
 0x3a1   : > { %4025 = vmatprep.subr.bf16.mxu1 %v5310_v37  ;;  %v3231_v16 = vrot.slane %v6763_v58, %v5963_v30  ;;  %v5299_v25 = vld [vmem:[%s6887_s9 + $0x80] ss:$8 sps:$4 sm:$0xff]  }
 0x3a3   : > { %3985 = vmatpush1.bf16.msra.mxu0 %v5260_v6  ;;  %v3227_v6 = vrot.slane %v6763_v58, %v5967_v33  ;;  %v3281_v27 = vadd.f32 %v6606_v21, %v3231_v16 }
 0x3a4   : > { %3986 = vmatprep.subr.bf16.mxu0 %v5265_v26  ;;  %4026 = vmatpush1.bf16.msra.mxu1 %v5308_v40 }
 0x3a5   : > { %4027 = vmatprep.subr.bf16.mxu1 %v5313_v41  ;;  %v3279_v26 = vadd.f32 %v6598_v57, %v3227_v6  ;;  %v5341_v57 = vld [vmem:[%s6887_s9 + $0x1a0] ss:$8 sps:$4 sm:$0xff]  }
 0x3a7   : > { %3987 = vmatpush1.bf16.msra.mxu0 %v5263_v31  ;;  %v3320_v28 = vadd.f32 %v6600_v20, %v3279_v26 }
 0x3a8   : > { %3988 = vmatprep.subr.bf16.mxu0 %v5268_v35  ;;  %4028 = vmatpush1.bf16.msra.mxu1 %v5311_v44  ;;  %v3322_v35 = vadd.f32 %v6608_v22, %v3281_v27 }
 0x3a9   : > { %4029 = vmatprep.subr.bf16.mxu1 %v5316_v45  ;;  %v5346_v45 = vld [vmem:[%s6887_s9 + $0x194] ss:$8 sps:$4 sm:$0xff]  }
 0x3ab   : > { %3989 = vmatpush1.bf16.msra.mxu0 %v5266_v38 }
 0x3ac   : > { %3990 = vmatprep.subr.bf16.mxu0 %v5271_v39  ;;  %4030 = vmatpush1.bf16.msra.mxu1 %v5314_v54  ;;  %v5343_v39 = vld [vmem:[%s6887_s9 + $0x1a4] ss:$8 sps:$4 sm:$0xff]  }
 0x3ad   : > { %4031 = vmatprep.subr.bf16.mxu1 %v5319_v55 }
 0x3af   : > { %3991 = vmatpush1.bf16.msra.mxu0 %v5269_v42 }
 0x3b0   : > { %3992 = vmatprep.subr.bf16.mxu0 %v5274_v43  ;;  %4032 = vmatpush1.bf16.msra.mxu1 %v5317_v61  ;;  %v5347_v61 = vld [vmem:[%s6887_s9 + $0x180] ss:$8 sps:$4 sm:$0xff]  }
 0x3b1   : > { %4033 = vmatprep.subr.bf16.mxu1 %v5322_v62 }
 0x3b3   : > { %3993 = vmatpush1.bf16.msra.mxu0 %v5272_v50 }
 0x3b4   : > { %3994 = vmatprep.subr.bf16.mxu0 %v5277_v51  ;;  %4034 = vmatpush1.bf16.msra.mxu1 %v5320_v1  ;;  %v5344_v51 = vld [vmem:[%s6887_s9 + $0x190] ss:$8 sps:$4 sm:$0xff]  }
 0x3b5   : > { %4035 = vmatprep.subr.bf16.mxu1 %v5325_v2 }
 0x3b7   : > { %3995 = vmatpush1.bf16.msra.mxu0 %v5275_v59  ;;  %v5349_v59 = vld [vmem:[%s6887_s9 + $0x184] ss:$8 sps:$4 sm:$0xff]  }
 0x3b8   : > { %3996 = vmatprep.subr.bf16.mxu0 %v5280_v60  ;;  %4036 = vmatpush1.bf16.msra.mxu1 %v5323_v7 }
 0x3b9   : > { %4037 = vmatprep.subr.bf16.mxu1 %v5328_v8 }
 0x3bb   : > { %3997 = vmatpush2.bf16.msra.mxu0 %v5278_v63 }
 0x3bc   : > { %3998 = vmatprep.subr.bf16.mxu0 %v5283_v0  ;;  %4038 = vmatpush2.bf16.msra.mxu1 %v5326_v47  ;;  %v5352_v47 = vld [vmem:[%s6889_s11 + $0x70] sm:$0xff]  }
 0x3bd   : > { %4039 = vmatprep.subr.bf16.mxu1 %v5331_v10  ;;  %v5353_v10 = vld [vmem:[%s6889_s11 + $0x30] sm:$0xff]  }
 0x3bf   : > { %3999 = vmatpush2.bf16.msra.mxu0 %v5281_v3 }
 0x3c0   : > { %4000 = vmatprep.subr.bf16.mxu0 %v5286_v4  ;;  %4040 = vmatpush2.bf16.msra.mxu1 %v5329_v49  ;;  %v5356_v49 = vld [vmem:[%s6889_s11 + $0x60] sm:$0xff]  }
 0x3c1   : > { %4041 = vmatprep.subr.bf16.mxu1 %v5334_v12  ;;  %v5357_v12 = vld [vmem:[%s6889_s11 + $0x20] sm:$0xff]  }
 0x3c3   : > { %4001 = vmatpush2.bf16.msra.mxu0 %v5284_v9  ;;  %v5350_v9 = vld [vmem:[%s6889_s11 + $0x78] sm:$0xff]  }
 0x3c4   : > { %4002 = vmatprep.subr.bf16.mxu0 %v5289_v46  ;;  %4042 = vmatpush2.bf16.msra.mxu1 %v5332_v15  ;;  %v5351_v46 = vld [vmem:[%s6889_s11 + $0x38] sm:$0xff]   ;;  %v3235_v15 = vrot.slane %v6763_v58, %v1648_v34 }
 0x3c5   : > { %4043 = vmatprep.subr.bf16.mxu1 %v5337_v17  ;;  %v3239_v17 = vrot.slane %v6763_v58, %v1652_v32 }
 0x3c7   : > { %4003 = vmatpush2.bf16.msra.mxu0 %v5287_v48  ;;  %v5354_v48 = vld [vmem:[%s6889_s11 + $0x68] sm:$0xff]  }
 0x3c8   : > { %4004 = vmatprep.subr.bf16.mxu0 %v5292_v11  ;;  %4044 = vmatpush2.bf16.msra.mxu1 %v5335_v52  ;;  %v5355_v11 = vld [vmem:[%s6889_s11 + $0x28] sm:$0xff]  }
 0x3c9   : > { %4045 = vmatprep.subr.bf16.mxu1 %v5340_v53 }
 0x3cb   : > { %4005 = vmatpush2.bf16.msra.mxu0 %v5290_v13  ;;  %v5358_v13 = vld [vmem:[%s6889_s11 + $0x58] sm:$0xff]  }
 0x3cc   : > { %4006 = vmatprep.subr.bf16.mxu0 %v5295_v14  ;;  %4046 = vmatpush2.bf16.msra.mxu1 %v5338_v24  ;;  %v5359_v14 = vld [vmem:[%s6889_s11 + $0x18] sm:$0xff]  }
 0x3cd   : > { %4047 = vmatprep.subr.bf16.mxu1 %v5343_v39  ;;  %v5360_v39 = vld [vmem:[%s6889_s11 + $0x50] sm:$0xff]  }
 0x3cf   : > { %4007 = vmatpush2.bf16.msra.mxu0 %v5293_v18 }
 0x3d0   : > { %4008 = vmatprep.subr.bf16.mxu0 %v5298_v19  ;;  %4048 = vmatpush2.bf16.msra.mxu1 %v5341_v57 }
 0x3d1   : > { %4049 = vmatprep.subr.bf16.mxu1 %v5346_v45 }
 0x3d3   : > { %4009 = vmatpush2.bf16.msra.mxu0 %v5296_v5 }
 0x3d4   : > { %4010 = vmatprep.subr.bf16.mxu0 %v5301_v23  ;;  %4050 = vmatpush2.bf16.msra.mxu1 %v5344_v51 }
 0x3d5   : > { %4051 = vmatprep.subr.bf16.mxu1 %v5349_v59 }
 0x3d7   : > { %4011 = vmatpush2.bf16.msra.mxu0 %v5299_v25 }
 0x3d8   : > { %4052 = vmatpush2.bf16.msra.mxu1 %v5347_v61  ;;  %4763 = vmatprep.subr.bf16.mxu0 %v5350_v9 }
 0x3da   : > { %v3360_v29 = vpop.f32.mrf.mxu0  ;;  %v3401_v31 = vpop.f32.mrf.mxu1 }
 0x3db   : > { %v3361_v36 = vadd.f32 %v3360_v29, %v3320_v28 }
 0x3dc   : > { %v3362_v37 = vpop.f32.mrf.mxu0  ;;  %v3403_v38 = vpop.f32.mrf.mxu1 }
 0x3dd   : > { %v3402_v40 = vadd.f32 %v3401_v31, %v3361_v36  ;;  %v3363_v41 = vadd.f32 %v3362_v37, %v3322_v35 }
 0x3de   : > { %v3364_v21 = vpop.f32.mrf.mxu0  ;;  %v3405_v42 = vpop.f32.mrf.mxu1 }
 0x3df   : > { %v3572_v20 = vmul.f32 0.2, %v3402_v40  ;;  %v3404_v43 = vadd.f32 %v3403_v38, %v3363_v41  ;;  %v5362_v21 = vld [vmem:[%s6889_s11 + $0x48] sm:$0xff]  }
 0x3e0   : > { %v3365_v22 = vpop.f32.mrf.mxu0  ;;  %v3406_v44 = vpop.f32.mrf.mxu1  ;;  %v5363_v42 = vld [vmem:[%s6889_s11 + $0x8] sm:$0xff]  }
 0x3e1   : > { %v3573_v50 = vmul.f32 0.2, %v3404_v43  ;;  %v3576_v54 = vmax.f32 %v3402_v40, %v3572_v20  ;;  %v5361_v40 = vld [vmem:[%s6889_s11 + $0x10] sm:$0xff]   ;;  %v5365_v22 = vld [vmem:[%s6889_s11] sm:$0xff]  }
 0x3e2   : > { %v3648_v44 = vld [vmem:[%s6888_s10] sm:$0x3] }
 0x3e3   : > { %v3577_v55 = vmax.f32 %v3404_v43, %v3573_v50  ;;  %v3580_v62 = vpack.c.bf16 %v3576_v54, %v3576_v54  ;;  %v5364_v43 = vld [vmem:[%s6889_s11 + $0x40] sm:$0xff]   ;;  %v3973_v45 = vrot.slane %v3648_v44, %v5967_v33  ;;  %v3977_v50 = vrot.slane %v3648_v44, %v5963_v30 }
 0x3e4   : > { %v4100_v30 = vld [vmem:[%s6890_s12] sm:$0x1] }
 0x3e5   : > { %v3581_v60 = vpack.c.bf16 %v3577_v55, %v3577_v55 }
 0x3e7   : > { %4012 = vmatprep.mubr.bf16.mxu0 %v3581_v60 }
 0x3e8   : > { %4013 = vmatmul.mubr.bf16.vlgmr.msra.gmra.mxu0 %v3580_v62 }
 0x3e9   : > { %4764 = vmatpush3.bf16.msra.mxu0 %v5351_v46 }
 0x3ea   : > { %4765 = vmatprep.subr.bf16.mxu0 %v5352_v47 }
 0x3ed   : > { %4766 = vmatpush3.bf16.msra.mxu0 %v5353_v10 }
 0x3ee   : > { %4767 = vmatprep.subr.bf16.mxu0 %v5354_v48 }
 0x3f1   : > { %4768 = vmatpush3.bf16.msra.mxu0 %v5355_v11 }
 0x3f2   : > { %4769 = vmatprep.subr.bf16.mxu0 %v5356_v49 }
 0x3f5   : > { %4770 = vmatpush3.bf16.msra.mxu0 %v5357_v12 }
 0x3f6   : > { %4771 = vmatprep.subr.bf16.mxu0 %v5358_v13 }
 0x3f9   : > { %4772 = vmatpush3.bf16.msra.mxu0 %v5359_v14 }
 0x3fa   : > { %4773 = vmatprep.subr.bf16.mxu0 %v5360_v39 }
 0x3fd   : > { %4774 = vmatpush3.bf16.msra.mxu0 %v5361_v40 }
 0x3fe   : > { %4775 = vmatprep.subr.bf16.mxu0 %v5362_v21 }
 0x401   : > { %4776 = vmatpush3.bf16.msra.mxu0 %v5363_v42 }
 0x402   : > { %4777 = vmatprep.subr.bf16.mxu0 %v5364_v43 }
 0x405   : > { %4778 = vmatpush3.bf16.msra.mxu0 %v5365_v22 }
 0x41a   : > { %v3442_v63 = vpop.f32.mrf.mxu0 }
 0x41b   : > { %v3483_v0 = vpop.f32.mrf.mxu1  ;;  %v3443_v18 = vadd.f32 %v3442_v63, %v3235_v15 }
 0x41c   : > { %v3444_v1 = vpop.f32.mrf.mxu0 }
 0x41d   : > { %v3485_v2 = vpop.f32.mrf.mxu1  ;;  %v3445_v19 = vadd.f32 %v3444_v1, %v3239_v17  ;;  %v3484_v52 = vadd.f32 %v3483_v0, %v3443_v18 }
 0x41e   : > { %v3446_v3 = vpop.f32.mrf.mxu0 }
 0x41f   : > { %v3487_v4 = vpop.f32.mrf.mxu1  ;;  %v3486_v5 = vadd.f32 %v3485_v2, %v3445_v19 }
 0x420   : > { %v3447_v7 = vpop.f32.mrf.mxu0 }
 0x421   : > { %v3488_v8 = vpop.f32.mrf.mxu1 }
 0x45a   : > { %v3524_v53 = vpop.f32.mrf.mxu0 }
 0x45b   : > { %v3525_v23 = vadd.f32 %v3524_v53, %v3484_v52  ;;  %v3565_v24 = vpop.f32.mrf.mxu1 }
 0x45c   : > { %v3526_v6 = vpop.f32.mrf.mxu0 }
 0x45d   : > { %v3566_v16 = vadd.f32 %v3565_v24, %v3525_v23  ;;  %v3527_v25 = vadd.f32 %v3526_v6, %v3486_v5  ;;  %v3567_v26 = vpop.f32.mrf.mxu1 }
 0x45e   : > { %v3528_v27 = vpop.f32.mrf.mxu0 }
 0x45f   : > { %v3574_v28 = vmul.f32 0.2, %v3566_v16  ;;  %v3568_v29 = vadd.f32 %v3567_v26, %v3527_v25  ;;  %v3569_v31 = vpop.f32.mrf.mxu1 }
 0x460   : > { %v3529_v34 = vpop.f32.mrf.mxu0 }
 0x461   : > { %v3575_v35 = vmul.f32 0.2, %v3568_v29  ;;  %v3570_v56 = vpop.f32.mrf.mxu1  ;;  %v3578_v36 = vmax.f32 %v3566_v16, %v3574_v28 }
 0x463   : > { %v3579_v32 = vmax.f32 %v3568_v29, %v3575_v35  ;;  %v3582_v37 = vpack.c.bf16 %v3578_v36, %v3578_v36 }
 0x465   : > { %v3583_v58 = vpack.c.bf16 %v3579_v32, %v3579_v32 }
 0x467   : > { %4053 = vmatprep.mubr.bf16.mxu1 %v3583_v58 }
 0x468   : > { %4054 = vmatmul.mubr.bf16.vlgmr.msra.gmra.mxu1 %v3582_v37 }
 0x4a8   : > { %v4014_v38 = vpop.f32.mrf.mxu0 }
 0x4a9   : > { %v4015_v51 = vadd.f32 %v4014_v38, %v3973_v45 }
 0x4aa   : > { %v4016_v41 = vpop.f32.mrf.mxu0 }
 0x4ab   : > { %v4017_v55 = vadd.f32 %v4016_v41, %v3977_v50 }
 0x4ac   : > { %v4018_v57 = vpop.f32.mrf.mxu0 }
 0x4ae   : > { %v4019_v20 = vpop.f32.mrf.mxu0 }
 0x528   : > { %v4055_v54 = vpop.f32.mrf.mxu1 }
 0x529   : > { %v4056_v59 = vadd.f32 %v4055_v54, %v4015_v51 }
 0x52a   : > { %v4057_v60 = vpop.f32.mrf.mxu1 }
 0x52b   : > { %v4062_v61 = vmul.f32 0.2, %v4056_v59  ;;  %v4058_v62 = vadd.f32 %v4057_v60, %v4017_v55 }
 0x52c   : > { %v4059_v63 = vpop.f32.mrf.mxu1 }
 0x52d   : > { %v4063_v0 = vmul.f32 0.2, %v4058_v62  ;;  %v4064_v1 = vmax.f32 %v4056_v59, %v4062_v61 }
 0x52e   : > { %v4060_v2 = vpop.f32.mrf.mxu1 }
 0x52f   : > { %v4065_v3 = vmax.f32 %v4058_v62, %v4063_v0  ;;  %v4066_v7 = vpack.c.bf16 %v4064_v1, %v4064_v1 }
 0x531   : > { %v4067_v4 = vpack.c.bf16 %v4065_v3, %v4065_v3 }
 0x533   : > { %4229 = vmatprep.mubr.bf16.mxu0 %v4067_v4 }
 0x534   : > { %4230 = vmatmul.mubr.bf16.vlgmr.msra.gmra.mxu0 %v4066_v7 }
 0x5f4   : > { %v4779_v33 = vpop.f32.mrf.mxu0 }
 0x5f6   : > { %v4780_v8 = vpop.f32.mrf.mxu0 }
 0x5f7   : > { %v4781_v9 = vadd.f32 %v4780_v8, %v4779_v33 }
 0x5f8   : > { %v4782_v46 = vpop.f32.mrf.mxu0 }
 0x5f9   : > { %v4232_v47 = vadd.f32 %v4781_v9, %v4100_v30 }
 0x5fa   : > { %v4783_v10 = vpop.f32.mrf.mxu0 }
 0x5fb   : > { %4237 = vst [vmem:[%s464_s23] sm:$0x1] %v4232_v47 }
 0x5fc PF: > { %s23_s27 = sadd.s32 1, %s5388_s27   ;;  %s6892_s25 = smov %s5384_s26 }
 0x5fd   : > { %p20_p5 = scmp.ge.s32.totalorder %s23_s27, 4   ;;  %s6893_s26 = smov %s6895_s28 }
 0x5ff   :  { %22 = sbr.rel (!%p20_p5) target bundleno = 2 (0x2), region = 114 }

</bundles_post_ra>
